<compile_context>
chip_gen: v7x
topology: tpu7x:2x2x1
jax: 0.10.0
libtpu: 0.0.40
codegen_flags: <defaults>
</compile_context>

<pallas_src>
import jax
import jax.numpy as jnp
from jax.experimental import pallas as pl
from jax.experimental.pallas import tpu as pltpu

NUM_LAYERS = 20
FEATURES = 10
LANES = 128      # vreg lane width
SUBLANES = 8     # f32 vreg sublane height


# ----------------------------- Pallas kernel -------------------------------

def _linear_chain_kernel(x_ref, w_ref, b_ref, o_ref):
    # x_ref: (M_pad, 128), w_ref: (L, 128, 128), b_ref: (L, 1, 128)
    x = x_ref[...]
    for i in range(NUM_LAYERS):          # static unroll: 20 chained MXU matmuls
        x = jnp.dot(x, w_ref[i], preferred_element_type=jnp.float32) + b_ref[i]
    o_ref[...] = x.astype(o_ref.dtype)


# ------------------------------ wrapper -------------------------------------

def module_list_forward(params, x):
    """Applies the 20 Linear(10,10) layers in order. x: (N, 10) -> (N, 10)."""
    w_all, b_all = params                  # (20, 10, 10) in (K, N) layout; (20, 10)
    n, f = x.shape
    m_pad = max(SUBLANES, pl.cdiv(n, SUBLANES) * SUBLANES)

    # Zero-pad once to lane/sublane-dense tiles (padding stays zero all the way).
    x_pad = jnp.zeros((m_pad, LANES), jnp.float32).at[:n, :f].set(x)
    w_pad = jnp.zeros((NUM_LAYERS, LANES, LANES), jnp.float32).at[:, :f, :f].set(w_all)
    b_pad = jnp.zeros((NUM_LAYERS, 1, LANES), jnp.float32).at[:, 0, :f].set(b_all)

    out = pl.pallas_call(
        _linear_chain_kernel,
        out_shape=jax.ShapeDtypeStruct((m_pad, LANES), jnp.float32),
        grid=(1,),
        in_specs=[
            pl.BlockSpec((m_pad, LANES), lambda i: (0, 0)),
            pl.BlockSpec((NUM_LAYERS, LANES, LANES), lambda i: (0, 0, 0)),
            pl.BlockSpec((NUM_LAYERS, 1, LANES), lambda i: (0, 0, 0)),
        ],
        out_specs=pl.BlockSpec((m_pad, LANES), lambda i: (0, 0)),
        compiler_params=pltpu.CompilerParams(dimension_semantics=("arbitrary",)),
    )(x_pad, w_pad, b_pad)
    return out[:n, :f]


# ------------------------------ params / ref ---------------------------------

def init_params(key):
    # torch nn.Linear(10,10): weight (out,in), bias (out,), U(-1/sqrt(in), 1/sqrt(in)).
    # Store the weight pre-transposed to (in,out)=(K,N) once, here at init.
    kw, kb = jax.random.split(key)
    bound = 1.0 / jnp.sqrt(FEATURES)
    w_torch = jax.random.uniform(
        kw, (NUM_LAYERS, FEATURES, FEATURES), jnp.float32, -bound, bound)
    b = jax.random.uniform(
        kb, (NUM_LAYERS, FEATURES), jnp.float32, -bound, bound)
    w_kn = jnp.transpose(w_torch, (0, 2, 1))   # (L, K, N)
    return (w_kn, b)


def reference_forward(params, x):
    w_all, b_all = params
    for i in range(NUM_LAYERS):
        x = jnp.dot(x, w_all[i], precision=jax.lax.Precision.HIGHEST) + b_all[i]
    return x


if __name__ == "__main__":
    key = jax.random.PRNGKey(0)
    pkey, xkey = jax.random.split(key)
    params = init_params(pkey)
    x = jax.random.normal(xkey, (4, FEATURES), jnp.float32)   # (batch=4, in=10)

    out = jax.block_until_ready(jax.jit(module_list_forward)(params, x))
    ref = reference_forward(params, x)
    assert out.shape == (4, FEATURES), out.shape
    assert jnp.allclose(out, ref, atol=1e-3, rtol=1e-3), float(jnp.max(jnp.abs(out - ref)))
    print("KERNEL_OK")
</pallas_src>

<mosaic_0001>
module attributes {stable_mosaic.version = 11 : i64} {
  func.func @_linear_chain_kernel(%arg0: i32, %arg1: memref<8x128xf32, #tpu.memory_space<vmem>>, %arg2: memref<20x128x128xf32, #tpu.memory_space<vmem>>, %arg3: memref<20x1x128xf32, #tpu.memory_space<vmem>>, %arg4: memref<8x128xf32, #tpu.memory_space<vmem>>) attributes {dimension_semantics = [#tpu.dimension_semantics<arbitrary>], iteration_bounds = array<i64: 1>, scalar_prefetch = 0 : i64, scratch_operands = 0 : i64, tpu.core_type = #tpu.core_type<tc>, window_params = [{pipeline_mode = #tpu.pipeline_mode<synchronous>, transform_indices = @transform_0, window_bounds = array<i64: 8, 128>}, {pipeline_mode = #tpu.pipeline_mode<synchronous>, transform_indices = @transform_1, window_bounds = array<i64: 20, 128, 128>}, {pipeline_mode = #tpu.pipeline_mode<synchronous>, transform_indices = @transform_2, window_bounds = array<i64: 20, 1, 128>}, {pipeline_mode = #tpu.pipeline_mode<synchronous>, transform_indices = @transform_3, window_bounds = array<i64: 8, 128>}]} {
    %c0 = arith.constant 0 : index
    %c0_0 = arith.constant 0 : index
    %0 = vector.load %arg1[%c0, %c0_0] : memref<8x128xf32, #tpu.memory_space<vmem>>, vector<8x128xf32>
    %c0_1 = arith.constant 0 : index
    %c0_2 = arith.constant 0 : index
    %c0_3 = arith.constant 0 : index
    %1 = vector.load %arg2[%c0_1, %c0_2, %c0_3] : memref<20x128x128xf32, #tpu.memory_space<vmem>>, vector<1x128x128xf32>
    %2 = vector.shape_cast %1 : vector<1x128x128xf32> to vector<128x128xf32>
    %cst = arith.constant dense<0.000000e+00> : vector<8x128xf32>
    %3 = tpu.matmul %0, %2, %cst {dimension_numbers = #tpu.dot_dimension_numbers<[1], [0], [0], [1], [0, 0, 1, 1], [], []>} : vector<8x128xf32>, vector<128x128xf32>, vector<8x128xf32> -> vector<8x128xf32>
    %c0_4 = arith.constant 0 : index
    %c0_5 = arith.constant 0 : index
    %c0_6 = arith.constant 0 : index
    %4 = vector.load %arg3[%c0_4, %c0_5, %c0_6] : memref<20x1x128xf32, #tpu.memory_space<vmem>>, vector<1x1x128xf32>
    %5 = vector.shape_cast %4 : vector<1x1x128xf32> to vector<1x128xf32>
    %6 = vector.broadcast %5 : vector<1x128xf32> to vector<8x128xf32>
    %7 = arith.addf %3, %6 : vector<8x128xf32>
    %c1 = arith.constant 1 : index
    %c0_7 = arith.constant 0 : index
    %c0_8 = arith.constant 0 : index
    %8 = vector.load %arg2[%c1, %c0_7, %c0_8] : memref<20x128x128xf32, #tpu.memory_space<vmem>>, vector<1x128x128xf32>
    %9 = vector.shape_cast %8 : vector<1x128x128xf32> to vector<128x128xf32>
    %cst_9 = arith.constant dense<0.000000e+00> : vector<8x128xf32>
    %10 = tpu.matmul %7, %9, %cst_9 {dimension_numbers = #tpu.dot_dimension_numbers<[1], [0], [0], [1], [0, 0, 1, 1], [], []>} : vector<8x128xf32>, vector<128x128xf32>, vector<8x128xf32> -> vector<8x128xf32>
    %c1_10 = arith.constant 1 : index
    %c0_11 = arith.constant 0 : index
    %c0_12 = arith.constant 0 : index
    %11 = vector.load %arg3[%c1_10, %c0_11, %c0_12] : memref<20x1x128xf32, #tpu.memory_space<vmem>>, vector<1x1x128xf32>
    %12 = vector.shape_cast %11 : vector<1x1x128xf32> to vector<1x128xf32>
    %13 = vector.broadcast %12 : vector<1x128xf32> to vector<8x128xf32>
    %14 = arith.addf %10, %13 : vector<8x128xf32>
    %c2 = arith.constant 2 : index
    %c0_13 = arith.constant 0 : index
    %c0_14 = arith.constant 0 : index
    %15 = vector.load %arg2[%c2, %c0_13, %c0_14] : memref<20x128x128xf32, #tpu.memory_space<vmem>>, vector<1x128x128xf32>
    %16 = vector.shape_cast %15 : vector<1x128x128xf32> to vector<128x128xf32>
    %cst_15 = arith.constant dense<0.000000e+00> : vector<8x128xf32>
    %17 = tpu.matmul %14, %16, %cst_15 {dimension_numbers = #tpu.dot_dimension_numbers<[1], [0], [0], [1], [0, 0, 1, 1], [], []>} : vector<8x128xf32>, vector<128x128xf32>, vector<8x128xf32> -> vector<8x128xf32>
    %c2_16 = arith.constant 2 : index
    %c0_17 = arith.constant 0 : index
    %c0_18 = arith.constant 0 : index
    %18 = vector.load %arg3[%c2_16, %c0_17, %c0_18] : memref<20x1x128xf32, #tpu.memory_space<vmem>>, vector<1x1x128xf32>
    %19 = vector.shape_cast %18 : vector<1x1x128xf32> to vector<1x128xf32>
    %20 = vector.broadcast %19 : vector<1x128xf32> to vector<8x128xf32>
    %21 = arith.addf %17, %20 : vector<8x128xf32>
    %c3 = arith.constant 3 : index
    %c0_19 = arith.constant 0 : index
    %c0_20 = arith.constant 0 : index
    %22 = vector.load %arg2[%c3, %c0_19, %c0_20] : memref<20x128x128xf32, #tpu.memory_space<vmem>>, vector<1x128x128xf32>
    %23 = vector.shape_cast %22 : vector<1x128x128xf32> to vector<128x128xf32>
    %cst_21 = arith.constant dense<0.000000e+00> : vector<8x128xf32>
    %24 = tpu.matmul %21, %23, %cst_21 {dimension_numbers = #tpu.dot_dimension_numbers<[1], [0], [0], [1], [0, 0, 1, 1], [], []>} : vector<8x128xf32>, vector<128x128xf32>, vector<8x128xf32> -> vector<8x128xf32>
    %c3_22 = arith.constant 3 : index
    %c0_23 = arith.constant 0 : index
    %c0_24 = arith.constant 0 : index
    %25 = vector.load %arg3[%c3_22, %c0_23, %c0_24] : memref<20x1x128xf32, #tpu.memory_space<vmem>>, vector<1x1x128xf32>
    %26 = vector.shape_cast %25 : vector<1x1x128xf32> to vector<1x128xf32>
    %27 = vector.broadcast %26 : vector<1x128xf32> to vector<8x128xf32>
    %28 = arith.addf %24, %27 : vector<8x128xf32>
    %c4 = arith.constant 4 : index
    %c0_25 = arith.constant 0 : index
    %c0_26 = arith.constant 0 : index
    %29 = vector.load %arg2[%c4, %c0_25, %c0_26] : memref<20x128x128xf32, #tpu.memory_space<vmem>>, vector<1x128x128xf32>
    %30 = vector.shape_cast %29 : vector<1x128x128xf32> to vector<128x128xf32>
    %cst_27 = arith.constant dense<0.000000e+00> : vector<8x128xf32>
    %31 = tpu.matmul %28, %30, %cst_27 {dimension_numbers = #tpu.dot_dimension_numbers<[1], [0], [0], [1], [0, 0, 1, 1], [], []>} : vector<8x128xf32>, vector<128x128xf32>, vector<8x128xf32> -> vector<8x128xf32>
    %c4_28 = arith.constant 4 : index
    %c0_29 = arith.constant 0 : index
    %c0_30 = arith.constant 0 : index
    %32 = vector.load %arg3[%c4_28, %c0_29, %c0_30] : memref<20x1x128xf32, #tpu.memory_space<vmem>>, vector<1x1x128xf32>
    %33 = vector.shape_cast %32 : vector<1x1x128xf32> to vector<1x128xf32>
    %34 = vector.broadcast %33 : vector<1x128xf32> to vector<8x128xf32>
    %35 = arith.addf %31, %34 : vector<8x128xf32>
    %c5 = arith.constant 5 : index
    %c0_31 = arith.constant 0 : index
    %c0_32 = arith.constant 0 : index
    %36 = vector.load %arg2[%c5, %c0_31, %c0_32] : memref<20x128x128xf32, #tpu.memory_space<vmem>>, vector<1x128x128xf32>
    %37 = vector.shape_cast %36 : vector<1x128x128xf32> to vector<128x128xf32>
    %cst_33 = arith.constant dense<0.000000e+00> : vector<8x128xf32>
    %38 = tpu.matmul %35, %37, %cst_33 {dimension_numbers = #tpu.dot_dimension_numbers<[1], [0], [0], [1], [0, 0, 1, 1], [], []>} : vector<8x128xf32>, vector<128x128xf32>, vector<8x128xf32> -> vector<8x128xf32>
    %c5_34 = arith.constant 5 : index
    %c0_35 = arith.constant 0 : index
    %c0_36 = arith.constant 0 : index
    %39 = vector.load %arg3[%c5_34, %c0_35, %c0_36] : memref<20x1x128xf32, #tpu.memory_space<vmem>>, vector<1x1x128xf32>
    %40 = vector.shape_cast %39 : vector<1x1x128xf32> to vector<1x128xf32>
    %41 = vector.broadcast %40 : vector<1x128xf32> to vector<8x128xf32>
    %42 = arith.addf %38, %41 : vector<8x128xf32>
    %c6 = arith.constant 6 : index
    %c0_37 = arith.constant 0 : index
    %c0_38 = arith.constant 0 : index
    %43 = vector.load %arg2[%c6, %c0_37, %c0_38] : memref<20x128x128xf32, #tpu.memory_space<vmem>>, vector<1x128x128xf32>
    %44 = vector.shape_cast %43 : vector<1x128x128xf32> to vector<128x128xf32>
    %cst_39 = arith.constant dense<0.000000e+00> : vector<8x128xf32>
    %45 = tpu.matmul %42, %44, %cst_39 {dimension_numbers = #tpu.dot_dimension_numbers<[1], [0], [0], [1], [0, 0, 1, 1], [], []>} : vector<8x128xf32>, vector<128x128xf32>, vector<8x128xf32> -> vector<8x128xf32>
    %c6_40 = arith.constant 6 : index
    %c0_41 = arith.constant 0 : index
    %c0_42 = arith.constant 0 : index
    %46 = vector.load %arg3[%c6_40, %c0_41, %c0_42] : memref<20x1x128xf32, #tpu.memory_space<vmem>>, vector<1x1x128xf32>
    %47 = vector.shape_cast %46 : vector<1x1x128xf32> to vector<1x128xf32>
    %48 = vector.broadcast %47 : vector<1x128xf32> to vector<8x128xf32>
    %49 = arith.addf %45, %48 : vector<8x128xf32>
    %c7 = arith.constant 7 : index
    %c0_43 = arith.constant 0 : index
    %c0_44 = arith.constant 0 : index
    %50 = vector.load %arg2[%c7, %c0_43, %c0_44] : memref<20x128x128xf32, #tpu.memory_space<vmem>>, vector<1x128x128xf32>
    %51 = vector.shape_cast %50 : vector<1x128x128xf32> to vector<128x128xf32>
    %cst_45 = arith.constant dense<0.000000e+00> : vector<8x128xf32>
    %52 = tpu.matmul %49, %51, %cst_45 {dimension_numbers = #tpu.dot_dimension_numbers<[1], [0], [0], [1], [0, 0, 1, 1], [], []>} : vector<8x128xf32>, vector<128x128xf32>, vector<8x128xf32> -> vector<8x128xf32>
    %c7_46 = arith.constant 7 : index
    %c0_47 = arith.constant 0 : index
    %c0_48 = arith.constant 0 : index
    %53 = vector.load %arg3[%c7_46, %c0_47, %c0_48] : memref<20x1x128xf32, #tpu.memory_space<vmem>>, vector<1x1x128xf32>
    %54 = vector.shape_cast %53 : vector<1x1x128xf32> to vector<1x128xf32>
    %55 = vector.broadcast %54 : vector<1x128xf32> to vector<8x128xf32>
    %56 = arith.addf %52, %55 : vector<8x128xf32>
    %c8 = arith.constant 8 : index
    %c0_49 = arith.constant 0 : index
    %c0_50 = arith.constant 0 : index
    %57 = vector.load %arg2[%c8, %c0_49, %c0_50] : memref<20x128x128xf32, #tpu.memory_space<vmem>>, vector<1x128x128xf32>
    %58 = vector.shape_cast %57 : vector<1x128x128xf32> to vector<128x128xf32>
    %cst_51 = arith.constant dense<0.000000e+00> : vector<8x128xf32>
    %59 = tpu.matmul %56, %58, %cst_51 {dimension_numbers = #tpu.dot_dimension_numbers<[1], [0], [0], [1], [0, 0, 1, 1], [], []>} : vector<8x128xf32>, vector<128x128xf32>, vector<8x128xf32> -> vector<8x128xf32>
    %c8_52 = arith.constant 8 : index
    %c0_53 = arith.constant 0 : index
    %c0_54 = arith.constant 0 : index
    %60 = vector.load %arg3[%c8_52, %c0_53, %c0_54] : memref<20x1x128xf32, #tpu.memory_space<vmem>>, vector<1x1x128xf32>
    %61 = vector.shape_cast %60 : vector<1x1x128xf32> to vector<1x128xf32>
    %62 = vector.broadcast %61 : vector<1x128xf32> to vector<8x128xf32>
    %63 = arith.addf %59, %62 : vector<8x128xf32>
    %c9 = arith.constant 9 : index
    %c0_55 = arith.constant 0 : index
    %c0_56 = arith.constant 0 : index
    %64 = vector.load %arg2[%c9, %c0_55, %c0_56] : memref<20x128x128xf32, #tpu.memory_space<vmem>>, vector<1x128x128xf32>
    %65 = vector.shape_cast %64 : vector<1x128x128xf32> to vector<128x128xf32>
    %cst_57 = arith.constant dense<0.000000e+00> : vector<8x128xf32>
    %66 = tpu.matmul %63, %65, %cst_57 {dimension_numbers = #tpu.dot_dimension_numbers<[1], [0], [0], [1], [0, 0, 1, 1], [], []>} : vector<8x128xf32>, vector<128x128xf32>, vector<8x128xf32> -> vector<8x128xf32>
    %c9_58 = arith.constant 9 : index
    %c0_59 = arith.constant 0 : index
    %c0_60 = arith.constant 0 : index
    %67 = vector.load %arg3[%c9_58, %c0_59, %c0_60] : memref<20x1x128xf32, #tpu.memory_space<vmem>>, vector<1x1x128xf32>
    %68 = vector.shape_cast %67 : vector<1x1x128xf32> to vector<1x128xf32>
    %69 = vector.broadcast %68 : vector<1x128xf32> to vector<8x128xf32>
    %70 = arith.addf %66, %69 : vector<8x128xf32>
    %c10 = arith.constant 10 : index
    %c0_61 = arith.constant 0 : index
    %c0_62 = arith.constant 0 : index
    %71 = vector.load %arg2[%c10, %c0_61, %c0_62] : memref<20x128x128xf32, #tpu.memory_space<vmem>>, vector<1x128x128xf32>
    %72 = vector.shape_cast %71 : vector<1x128x128xf32> to vector<128x128xf32>
    %cst_63 = arith.constant dense<0.000000e+00> : vector<8x128xf32>
    %73 = tpu.matmul %70, %72, %cst_63 {dimension_numbers = #tpu.dot_dimension_numbers<[1], [0], [0], [1], [0, 0, 1, 1], [], []>} : vector<8x128xf32>, vector<128x128xf32>, vector<8x128xf32> -> vector<8x128xf32>
    %c10_64 = arith.constant 10 : index
    %c0_65 = arith.constant 0 : index
    %c0_66 = arith.constant 0 : index
    %74 = vector.load %arg3[%c10_64, %c0_65, %c0_66] : memref<20x1x128xf32, #tpu.memory_space<vmem>>, vector<1x1x128xf32>
    %75 = vector.shape_cast %74 : vector<1x1x128xf32> to vector<1x128xf32>
    %76 = vector.broadcast %75 : vector<1x128xf32> to vector<8x128xf32>
    %77 = arith.addf %73, %76 : vector<8x128xf32>
    %c11 = arith.constant 11 : index
    %c0_67 = arith.constant 0 : index
    %c0_68 = arith.constant 0 : index
    %78 = vector.load %arg2[%c11, %c0_67, %c0_68] : memref<20x128x128xf32, #tpu.memory_space<vmem>>, vector<1x128x128xf32>
    %79 = vector.shape_cast %78 : vector<1x128x128xf32> to vector<128x128xf32>
    %cst_69 = arith.constant dense<0.000000e+00> : vector<8x128xf32>
    %80 = tpu.matmul %77, %79, %cst_69 {dimension_numbers = #tpu.dot_dimension_numbers<[1], [0], [0], [1], [0, 0, 1, 1], [], []>} : vector<8x128xf32>, vector<128x128xf32>, vector<8x128xf32> -> vector<8x128xf32>
    %c11_70 = arith.constant 11 : index
    %c0_71 = arith.constant 0 : index
    %c0_72 = arith.constant 0 : index
    %81 = vector.load %arg3[%c11_70, %c0_71, %c0_72] : memref<20x1x128xf32, #tpu.memory_space<vmem>>, vector<1x1x128xf32>
    %82 = vector.shape_cast %81 : vector<1x1x128xf32> to vector<1x128xf32>
    %83 = vector.broadcast %82 : vector<1x128xf32> to vector<8x128xf32>
    %84 = arith.addf %80, %83 : vector<8x128xf32>
    %c12 = arith.constant 12 : index
    %c0_73 = arith.constant 0 : index
    %c0_74 = arith.constant 0 : index
    %85 = vector.load %arg2[%c12, %c0_73, %c0_74] : memref<20x128x128xf32, #tpu.memory_space<vmem>>, vector<1x128x128xf32>
    %86 = vector.shape_cast %85 : vector<1x128x128xf32> to vector<128x128xf32>
    %cst_75 = arith.constant dense<0.000000e+00> : vector<8x128xf32>
    %87 = tpu.matmul %84, %86, %cst_75 {dimension_numbers = #tpu.dot_dimension_numbers<[1], [0], [0], [1], [0, 0, 1, 1], [], []>} : vector<8x128xf32>, vector<128x128xf32>, vector<8x128xf32> -> vector<8x128xf32>
    %c12_76 = arith.constant 12 : index
    %c0_77 = arith.constant 0 : index
    %c0_78 = arith.constant 0 : index
    %88 = vector.load %arg3[%c12_76, %c0_77, %c0_78] : memref<20x1x128xf32, #tpu.memory_space<vmem>>, vector<1x1x128xf32>
    %89 = vector.shape_cast %88 : vector<1x1x128xf32> to vector<1x128xf32>
    %90 = vector.broadcast %89 : vector<1x128xf32> to vector<8x128xf32>
    %91 = arith.addf %87, %90 : vector<8x128xf32>
    %c13 = arith.constant 13 : index
    %c0_79 = arith.constant 0 : index
    %c0_80 = arith.constant 0 : index
    %92 = vector.load %arg2[%c13, %c0_79, %c0_80] : memref<20x128x128xf32, #tpu.memory_space<vmem>>, vector<1x128x128xf32>
    %93 = vector.shape_cast %92 : vector<1x128x128xf32> to vector<128x128xf32>
    %cst_81 = arith.constant dense<0.000000e+00> : vector<8x128xf32>
    %94 = tpu.matmul %91, %93, %cst_81 {dimension_numbers = #tpu.dot_dimension_numbers<[1], [0], [0], [1], [0, 0, 1, 1], [], []>} : vector<8x128xf32>, vector<128x128xf32>, vector<8x128xf32> -> vector<8x128xf32>
    %c13_82 = arith.constant 13 : index
    %c0_83 = arith.constant 0 : index
    %c0_84 = arith.constant 0 : index
    %95 = vector.load %arg3[%c13_82, %c0_83, %c0_84] : memref<20x1x128xf32, #tpu.memory_space<vmem>>, vector<1x1x128xf32>
    %96 = vector.shape_cast %95 : vector<1x1x128xf32> to vector<1x128xf32>
    %97 = vector.broadcast %96 : vector<1x128xf32> to vector<8x128xf32>
    %98 = arith.addf %94, %97 : vector<8x128xf32>
    %c14 = arith.constant 14 : index
    %c0_85 = arith.constant 0 : index
    %c0_86 = arith.constant 0 : index
    %99 = vector.load %arg2[%c14, %c0_85, %c0_86] : memref<20x128x128xf32, #tpu.memory_space<vmem>>, vector<1x128x128xf32>
    %100 = vector.shape_cast %99 : vector<1x128x128xf32> to vector<128x128xf32>
    %cst_87 = arith.constant dense<0.000000e+00> : vector<8x128xf32>
    %101 = tpu.matmul %98, %100, %cst_87 {dimension_numbers = #tpu.dot_dimension_numbers<[1], [0], [0], [1], [0, 0, 1, 1], [], []>} : vector<8x128xf32>, vector<128x128xf32>, vector<8x128xf32> -> vector<8x128xf32>
    %c14_88 = arith.constant 14 : index
    %c0_89 = arith.constant 0 : index
    %c0_90 = arith.constant 0 : index
    %102 = vector.load %arg3[%c14_88, %c0_89, %c0_90] : memref<20x1x128xf32, #tpu.memory_space<vmem>>, vector<1x1x128xf32>
    %103 = vector.shape_cast %102 : vector<1x1x128xf32> to vector<1x128xf32>
    %104 = vector.broadcast %103 : vector<1x128xf32> to vector<8x128xf32>
    %105 = arith.addf %101, %104 : vector<8x128xf32>
    %c15 = arith.constant 15 : index
    %c0_91 = arith.constant 0 : index
    %c0_92 = arith.constant 0 : index
    %106 = vector.load %arg2[%c15, %c0_91, %c0_92] : memref<20x128x128xf32, #tpu.memory_space<vmem>>, vector<1x128x128xf32>
    %107 = vector.shape_cast %106 : vector<1x128x128xf32> to vector<128x128xf32>
    %cst_93 = arith.constant dense<0.000000e+00> : vector<8x128xf32>
    %108 = tpu.matmul %105, %107, %cst_93 {dimension_numbers = #tpu.dot_dimension_numbers<[1], [0], [0], [1], [0, 0, 1, 1], [], []>} : vector<8x128xf32>, vector<128x128xf32>, vector<8x128xf32> -> vector<8x128xf32>
    %c15_94 = arith.constant 15 : index
    %c0_95 = arith.constant 0 : index
    %c0_96 = arith.constant 0 : index
    %109 = vector.load %arg3[%c15_94, %c0_95, %c0_96] : memref<20x1x128xf32, #tpu.memory_space<vmem>>, vector<1x1x128xf32>
    %110 = vector.shape_cast %109 : vector<1x1x128xf32> to vector<1x128xf32>
    %111 = vector.broadcast %110 : vector<1x128xf32> to vector<8x128xf32>
    %112 = arith.addf %108, %111 : vector<8x128xf32>
    %c16 = arith.constant 16 : index
    %c0_97 = arith.constant 0 : index
    %c0_98 = arith.constant 0 : index
    %113 = vector.load %arg2[%c16, %c0_97, %c0_98] : memref<20x128x128xf32, #tpu.memory_space<vmem>>, vector<1x128x128xf32>
    %114 = vector.shape_cast %113 : vector<1x128x128xf32> to vector<128x128xf32>
    %cst_99 = arith.constant dense<0.000000e+00> : vector<8x128xf32>
    %115 = tpu.matmul %112, %114, %cst_99 {dimension_numbers = #tpu.dot_dimension_numbers<[1], [0], [0], [1], [0, 0, 1, 1], [], []>} : vector<8x128xf32>, vector<128x128xf32>, vector<8x128xf32> -> vector<8x128xf32>
    %c16_100 = arith.constant 16 : index
    %c0_101 = arith.constant 0 : index
    %c0_102 = arith.constant 0 : index
    %116 = vector.load %arg3[%c16_100, %c0_101, %c0_102] : memref<20x1x128xf32, #tpu.memory_space<vmem>>, vector<1x1x128xf32>
    %117 = vector.shape_cast %116 : vector<1x1x128xf32> to vector<1x128xf32>
    %118 = vector.broadcast %117 : vector<1x128xf32> to vector<8x128xf32>
    %119 = arith.addf %115, %118 : vector<8x128xf32>
    %c17 = arith.constant 17 : index
    %c0_103 = arith.constant 0 : index
    %c0_104 = arith.constant 0 : index
    %120 = vector.load %arg2[%c17, %c0_103, %c0_104] : memref<20x128x128xf32, #tpu.memory_space<vmem>>, vector<1x128x128xf32>
    %121 = vector.shape_cast %120 : vector<1x128x128xf32> to vector<128x128xf32>
    %cst_105 = arith.constant dense<0.000000e+00> : vector<8x128xf32>
    %122 = tpu.matmul %119, %121, %cst_105 {dimension_numbers = #tpu.dot_dimension_numbers<[1], [0], [0], [1], [0, 0, 1, 1], [], []>} : vector<8x128xf32>, vector<128x128xf32>, vector<8x128xf32> -> vector<8x128xf32>
    %c17_106 = arith.constant 17 : index
    %c0_107 = arith.constant 0 : index
    %c0_108 = arith.constant 0 : index
    %123 = vector.load %arg3[%c17_106, %c0_107, %c0_108] : memref<20x1x128xf32, #tpu.memory_space<vmem>>, vector<1x1x128xf32>
    %124 = vector.shape_cast %123 : vector<1x1x128xf32> to vector<1x128xf32>
    %125 = vector.broadcast %124 : vector<1x128xf32> to vector<8x128xf32>
    %126 = arith.addf %122, %125 : vector<8x128xf32>
    %c18 = arith.constant 18 : index
    %c0_109 = arith.constant 0 : index
    %c0_110 = arith.constant 0 : index
    %127 = vector.load %arg2[%c18, %c0_109, %c0_110] : memref<20x128x128xf32, #tpu.memory_space<vmem>>, vector<1x128x128xf32>
    %128 = vector.shape_cast %127 : vector<1x128x128xf32> to vector<128x128xf32>
    %cst_111 = arith.constant dense<0.000000e+00> : vector<8x128xf32>
    %129 = tpu.matmul %126, %128, %cst_111 {dimension_numbers = #tpu.dot_dimension_numbers<[1], [0], [0], [1], [0, 0, 1, 1], [], []>} : vector<8x128xf32>, vector<128x128xf32>, vector<8x128xf32> -> vector<8x128xf32>
    %c18_112 = arith.constant 18 : index
    %c0_113 = arith.constant 0 : index
    %c0_114 = arith.constant 0 : index
    %130 = vector.load %arg3[%c18_112, %c0_113, %c0_114] : memref<20x1x128xf32, #tpu.memory_space<vmem>>, vector<1x1x128xf32>
    %131 = vector.shape_cast %130 : vector<1x1x128xf32> to vector<1x128xf32>
    %132 = vector.broadcast %131 : vector<1x128xf32> to vector<8x128xf32>
    %133 = arith.addf %129, %132 : vector<8x128xf32>
    %c19 = arith.constant 19 : index
    %c0_115 = arith.constant 0 : index
    %c0_116 = arith.constant 0 : index
    %134 = vector.load %arg2[%c19, %c0_115, %c0_116] : memref<20x128x128xf32, #tpu.memory_space<vmem>>, vector<1x128x128xf32>
    %135 = vector.shape_cast %134 : vector<1x128x128xf32> to vector<128x128xf32>
    %cst_117 = arith.constant dense<0.000000e+00> : vector<8x128xf32>
    %136 = tpu.matmul %133, %135, %cst_117 {dimension_numbers = #tpu.dot_dimension_numbers<[1], [0], [0], [1], [0, 0, 1, 1], [], []>} : vector<8x128xf32>, vector<128x128xf32>, vector<8x128xf32> -> vector<8x128xf32>
    %c19_118 = arith.constant 19 : index
    %c0_119 = arith.constant 0 : index
    %c0_120 = arith.constant 0 : index
    %137 = vector.load %arg3[%c19_118, %c0_119, %c0_120] : memref<20x1x128xf32, #tpu.memory_space<vmem>>, vector<1x1x128xf32>
    %138 = vector.shape_cast %137 : vector<1x1x128xf32> to vector<1x128xf32>
    %139 = vector.broadcast %138 : vector<1x128xf32> to vector<8x128xf32>
    %140 = arith.addf %136, %139 : vector<8x128xf32>
    %c0_121 = arith.constant 0 : index
    %c0_122 = arith.constant 0 : index
    %141 = vector.load %arg4[%c0_121, %c0_122] : memref<8x128xf32, #tpu.memory_space<vmem>>, vector<8x128xf32>
    tpu.vector_store %arg4[%c0_121, %c0_122], %140 {strides = array<i32>} : memref<8x128xf32, #tpu.memory_space<vmem>>, vector<8x128xf32>,
    return
  }
  func.func @transform_0(%arg0: i32) -> (i32, i32) {
    %c0_i32 = arith.constant 0 : i32
    %c0_i32_0 = arith.constant 0 : i32
    %c0_i32_1 = arith.constant 0 : i32
    return %c0_i32, %c0_i32_0 : i32, i32
  }
  func.func @transform_1(%arg0: i32) -> (i32, i32, i32) {
    %c0_i32 = arith.constant 0 : i32
    %c0_i32_0 = arith.constant 0 : i32
    %c0_i32_1 = arith.constant 0 : i32
    %c0_i32_2 = arith.constant 0 : i32
    return %c0_i32, %c0_i32_0, %c0_i32_1 : i32, i32, i32
  }
  func.func @transform_2(%arg0: i32) -> (i32, i32, i32) {
    %c0_i32 = arith.constant 0 : i32
    %c0_i32_0 = arith.constant 0 : i32
    %c0_i32_1 = arith.constant 0 : i32
    %c0_i32_2 = arith.constant 0 : i32
    return %c0_i32, %c0_i32_0, %c0_i32_1 : i32, i32, i32
  }
  func.func @transform_3(%arg0: i32) -> (i32, i32) {
    %c0_i32 = arith.constant 0 : i32
    %c0_i32_0 = arith.constant 0 : i32
    %c0_i32_1 = arith.constant 0 : i32
    return %c0_i32, %c0_i32_0 : i32, i32
  }
}

</mosaic_0001>

<bundles_post_ra>
// kernel: module_list_forward.1
= control target key start
LH: loop header
LB: loop body
LE: loop exit
PB: predicated region body
PF: predicated region fallthrough
CT: control target
= control target key end

     0   :  { %v3784_v0 = vmov 0.0|0.0   ;;  %vm3785_vm0 = vmmov 0   ;;  %v3786_v4 = vmov 0.0   ;;  %s5033_s1 = inlined_call_operand.vmem [shape: f32[20,128,128], index: 1, kind: input, shape index: {}]   ;;  %s5034_s0 = inlined_call_operand.vmem [shape: f32[8,128], index: 0, kind: input, shape index: {}]   ;;  %s5035_s2 = inlined_call_operand.vmem [shape: f32[20,1,128], index: 2, kind: input, shape index: {}]   ;;  %s5036_s3 = inlined_call_operand.vmem [shape: f32[8,128], index: 3, kind: output, shape index: {}]  }
   0x1   :  { %3301 = vmatprep.subr.bf16.mxu0 %v3784_v0  ;;  %v15_v1 = vld [vmem:[%s5033_s1] sm:$0xff]  ;;  %v16_v2 = vld [vmem:[%s5033_s1 + $0x8] sm:$0xff]  ;;  %v17_v3 = vld [vmem:[%s5033_s1 + $0x10] sm:$0xff]  ;;  %2633 = vmatprep.mubr.msk.f32.mxu0 %vm3785_vm0, %v3786_v4 }
   0x2   :  { %v3302_v5 = vpack.c.bf16 %v16_v2, %v15_v1  ;;  %v18_v6 = vld [vmem:[%s5033_s1 + $0x18] sm:$0xff]  ;;  %3325 = vmatprep.subr.bf16.mxu1 %v3784_v0  ;;  %2668 = vmatprep.mubr.msk.f32.mxu1 %vm3785_vm0, %v3786_v4  ;;  %v19_v8 = vld [vmem:[%s5033_s1 + $0x20] sm:$0xff]  ;;  %v20_v9 = vld [vmem:[%s5033_s1 + $0x28] sm:$0xff] }
   0x3   :  { %v3305_v7 = vpack.c.bf16 %v18_v6, %v17_v3  ;;  %v1919_v10 = vld [vmem:[%s5033_s1 + $0x80] sm:$0xff]  ;;  %v1920_v11 = vld [vmem:[%s5033_s1 + $0x88] sm:$0xff]  ;;  %v1921_v12 = vld [vmem:[%s5033_s1 + $0x90] sm:$0xff]  ;;  %v3308_v14 = vpack.c.bf16 %v20_v9, %v19_v8 }
   0x4   :  { %3303 = vmatpush3.bf16.msra.mxu0 %v3302_v5  ;;  %v1922_v13 = vld [vmem:[%s5033_s1 + $0x98] sm:$0xff]  ;;  %v3326_v15 = vpack.c.bf16 %v1920_v11, %v1919_v10  ;;  %v21_v16 = vld [vmem:[%s5033_s1 + $0x30] sm:$0xff]  ;;  %v1923_v19 = vld [vmem:[%s5033_s1 + $0xa0] sm:$0xff] }
   0x5   :  { %3304 = vmatprep.subr.bf16.mxu0 %v3784_v0  ;;  %v22_v17 = vld [vmem:[%s5033_s1 + $0x38] sm:$0xff]  ;;  %v3329_v18 = vpack.c.bf16 %v1922_v13, %v1921_v12  ;;  %v1924_v20 = vld [vmem:[%s5033_s1 + $0xa8] sm:$0xff]  ;;  %v23_v22 = vld [vmem:[%s5033_s1 + $0x40] sm:$0xff] }
   0x6   :  { %3327 = vmatpush3.bf16.msra.mxu1 %v3326_v15  ;;  %v3311_v21 = vpack.c.bf16 %v22_v17, %v21_v16  ;;  %v24_v23 = vld [vmem:[%s5033_s1 + $0x48] sm:$0xff]  ;;  %v3332_v24 = vpack.c.bf16 %v1924_v20, %v1923_v19  ;;  %v1925_v25 = vld [vmem:[%s5033_s1 + $0xb0] sm:$0xff]  ;;  %v1926_v26 = vld [vmem:[%s5033_s1 + $0xb8] sm:$0xff] }
   0x7   :  { %3328 = vmatprep.subr.bf16.mxu1 %v3784_v0  ;;  %v3314_v27 = vpack.c.bf16 %v24_v23, %v23_v22  ;;  %v25_v28 = vld [vmem:[%s5033_s1 + $0x50] sm:$0xff]  ;;  %v26_v29 = vld [vmem:[%s5033_s1 + $0x58] sm:$0xff]  ;;  %v3335_v30 = vpack.c.bf16 %v1926_v26, %v1925_v25  ;;  %v1927_v31 = vld [vmem:[%s5033_s1 + $0xc0] sm:$0xff] }
   0x8   :  { %3306 = vmatpush3.bf16.msra.mxu0 %v3305_v7  ;;  %v1928_v32 = vld [vmem:[%s5033_s1 + $0xc8] sm:$0xff]  ;;  %v3317_v33 = vpack.c.bf16 %v26_v29, %v25_v28  ;;  %v27_v34 = vld [vmem:[%s5033_s1 + $0x60] sm:$0xff]  ;;  %v1929_v37 = vld [vmem:[%s5033_s1 + $0xd0] sm:$0xff] }
   0x9   :  { %3307 = vmatprep.subr.bf16.mxu0 %v3784_v0  ;;  %v28_v35 = vld [vmem:[%s5033_s1 + $0x68] sm:$0xff]  ;;  %v3338_v36 = vpack.c.bf16 %v1928_v32, %v1927_v31  ;;  %v1930_v38 = vld [vmem:[%s5033_s1 + $0xd8] sm:$0xff]  ;;  %v29_v40 = vld [vmem:[%s5033_s1 + $0x70] sm:$0xff] }
   0xa   :  { %3330 = vmatpush3.bf16.msra.mxu1 %v3329_v18  ;;  %v3320_v39 = vpack.c.bf16 %v28_v35, %v27_v34  ;;  %v30_v41 = vld [vmem:[%s5033_s1 + $0x78] sm:$0xff]  ;;  %v3341_v42 = vpack.c.bf16 %v1930_v38, %v1929_v37  ;;  %v1931_v43 = vld [vmem:[%s5033_s1 + $0xe0] sm:$0xff]  ;;  %v1932_v44 = vld [vmem:[%s5033_s1 + $0xe8] sm:$0xff] }
   0xb   :  { %3331 = vmatprep.subr.bf16.mxu1 %v3784_v0  ;;  %v3323_v45 = vpack.c.bf16 %v30_v41, %v29_v40  ;;  %v3344_v46 = vpack.c.bf16 %v1932_v44, %v1931_v43  ;;  %v14_v47 = vld [vmem:[%s5034_s0] sm:$0xff]  ;;  %v1933_v48 = vld [vmem:[%s5033_s1 + $0xf0] sm:$0xff]  ;;  %v1934_v49 = vld [vmem:[%s5033_s1 + $0xf8] sm:$0xff] }
   0xc   :  { %3309 = vmatpush3.bf16.msra.mxu0 %v3308_v14  ;;  %v3347_v50 = vpack.c.bf16 %v1934_v49, %v1933_v48  ;;  %v1937_v51 = vld [vmem:[%s5033_s1 + $0x100] sm:$0xff]  ;;  %v1938_v52 = vld [vmem:[%s5033_s1 + $0x108] sm:$0xff]  ;;  %v1939_v53 = vld [vmem:[%s5033_s1 + $0x110] sm:$0xff] }
   0xd   :  { %3310 = vmatprep.subr.bf16.mxu0 %v3784_v0  ;;  %v3350_v54 = vpack.c.bf16 %v1938_v52, %v1937_v51  ;;  %v1940_v55 = vld [vmem:[%s5033_s1 + $0x118] sm:$0xff]  ;;  %v1941_v57 = vld [vmem:[%s5033_s1 + $0x120] sm:$0xff]  ;;  %v1942_v58 = vld [vmem:[%s5033_s1 + $0x128] sm:$0xff] }
   0xe   :  { %3333 = vmatpush3.bf16.msra.mxu1 %v3332_v24  ;;  %v3353_v56 = vpack.c.bf16 %v1940_v55, %v1939_v53  ;;  %v3356_v59 = vpack.c.bf16 %v1942_v58, %v1941_v57  ;;  %v1943_v60 = vld [vmem:[%s5033_s1 + $0x130] sm:$0xff]  ;;  %v1944_v61 = vld [vmem:[%s5033_s1 + $0x138] sm:$0xff]  ;;  %v1945_v63 = vld [vmem:[%s5033_s1 + $0x140] sm:$0xff] }
   0xf   :  { %3334 = vmatprep.subr.bf16.mxu1 %v3784_v0  ;;  %v3359_v62 = vpack.c.bf16 %v1944_v61, %v1943_v60  ;;  %v1946_v1 = vld [vmem:[%s5033_s1 + $0x148] sm:$0xff]  ;;  %v1947_v3 = vld [vmem:[%s5033_s1 + $0x150] sm:$0xff]  ;;  %v1948_v5 = vld [vmem:[%s5033_s1 + $0x158] sm:$0xff] }
  0x10   :  { %3312 = vmatpush3.bf16.msra.mxu0 %v3311_v21  ;;  %v3362_v2 = vpack.c.bf16 %v1946_v1, %v1945_v63  ;;  %v3365_v6 = vpack.c.bf16 %v1948_v5, %v1947_v3  ;;  %v1949_v7 = vld [vmem:[%s5033_s1 + $0x160] sm:$0xff]  ;;  %v1950_v8 = vld [vmem:[%s5033_s1 + $0x168] sm:$0xff]  ;;  %v1951_v14 = vld [vmem:[%s5033_s1 + $0x170] sm:$0xff] }
  0x11   :  { %3313 = vmatprep.subr.bf16.mxu0 %v3784_v0  ;;  %v3368_v9 = vpack.c.bf16 %v1950_v8, %v1949_v7  ;;  %v1918_v10 = vld [vmem:[%s5035_s2] ss:$0 sm:$0xff]  ;;  %v1952_v15 = vld [vmem:[%s5033_s1 + $0x178] sm:$0xff]  ;;  %v1956_v18 = vld [vmem:[%s5033_s1 + $0x188] sm:$0xff] }
  0x12   :  { %3336 = vmatpush3.bf16.msra.mxu1 %v3335_v30  ;;  %v3371_v16 = vpack.c.bf16 %v1952_v15, %v1951_v14  ;;  %v1955_v17 = vld [vmem:[%s5033_s1 + $0x180] sm:$0xff]  ;;  %v1957_v19 = vld [vmem:[%s5033_s1 + $0x190] sm:$0xff]  ;;  %v1958_v21 = vld [vmem:[%s5033_s1 + $0x198] sm:$0xff] }
  0x13   :  { %3337 = vmatprep.subr.bf16.mxu1 %v3784_v0  ;;  %v3374_v20 = vpack.c.bf16 %v1956_v18, %v1955_v17  ;;  %v3377_v22 = vpack.c.bf16 %v1958_v21, %v1957_v19  ;;  %v1959_v23 = vld [vmem:[%s5033_s1 + $0x1a0] sm:$0xff]  ;;  %v1960_v24 = vld [vmem:[%s5033_s1 + $0x1a8] sm:$0xff]  ;;  %v1961_v26 = vld [vmem:[%s5033_s1 + $0x1b0] sm:$0xff] }
  0x14   :  { %3315 = vmatpush3.bf16.msra.mxu0 %v3314_v27  ;;  %v3380_v25 = vpack.c.bf16 %v1960_v24, %v1959_v23  ;;  %v1962_v27 = vld [vmem:[%s5033_s1 + $0x1b8] sm:$0xff]  ;;  %v1963_v29 = vld [vmem:[%s5033_s1 + $0x1c0] sm:$0xff]  ;;  %v1964_v30 = vld [vmem:[%s5033_s1 + $0x1c8] sm:$0xff] }
  0x15   :  { %3316 = vmatprep.subr.bf16.mxu0 %v3784_v0  ;;  %v3383_v28 = vpack.c.bf16 %v1962_v27, %v1961_v26  ;;  %v3386_v31 = vpack.c.bf16 %v1964_v30, %v1963_v29  ;;  %v1965_v32 = vld [vmem:[%s5033_s1 + $0x1d0] sm:$0xff]  ;;  %v1967_v35 = vld [vmem:[%s5033_s1 + $0x1e0] sm:$0xff]  ;;  %v1970_v43 = vld [vmem:[%s5033_s1 + $0x1f8] sm:$0xff] }
  0x16   :  { %3339 = vmatpush3.bf16.msra.mxu1 %v3338_v36  ;;  %v1968_v36 = vld [vmem:[%s5033_s1 + $0x1e8] sm:$0xff]  ;;  %v1936_v38 = vld [vmem:[%s5035_s2 + $0x1] ss:$0 sm:$0xff]  ;;  %v1976_v49 = vld [vmem:[%s5033_s1 + $0x218] sm:$0xff] }
  0x17   :  { %3340 = vmatprep.subr.bf16.mxu1 %v3784_v0  ;;  %v3392_v37 = vpack.c.bf16 %v1968_v36, %v1967_v35  ;;  %v1977_v51 = vld [vmem:[%s5033_s1 + $0x220] sm:$0xff]  ;;  %v1978_v52 = vld [vmem:[%s5033_s1 + $0x228] sm:$0xff]  ;;  %v1980_v55 = vld [vmem:[%s5033_s1 + $0x238] sm:$0xff] }
  0x18   :  { %3318 = vmatpush3.bf16.msra.mxu0 %v3317_v33  ;;  %v1966_v33 = vld [vmem:[%s5033_s1 + $0x1d8] sm:$0xff]  ;;  %v3404_v53 = vpack.c.bf16 %v1978_v52, %v1977_v51  ;;  %v1981_v57 = vld [vmem:[%s5033_s1 + $0x240] sm:$0xff]  ;;  %v1982_v58 = vld [vmem:[%s5033_s1 + $0x248] sm:$0xff] }
  0x19   :  { %3319 = vmatprep.subr.bf16.mxu0 %v3784_v0  ;;  %v3389_v34 = vpack.c.bf16 %v1966_v33, %v1965_v32  ;;  %v1983_v60 = vld [vmem:[%s5033_s1 + $0x250] sm:$0xff]  ;;  %v1984_v61 = vld [vmem:[%s5033_s1 + $0x258] sm:$0xff]  ;;  %v1985_v63 = vld [vmem:[%s5033_s1 + $0x260] sm:$0xff] }
  0x1a   :  { %3342 = vmatpush3.bf16.msra.mxu1 %v3341_v42  ;;  %v1969_v42 = vld [vmem:[%s5033_s1 + $0x1f0] sm:$0xff]  ;;  %v1986_v1 = vld [vmem:[%s5033_s1 + $0x268] sm:$0xff]  ;;  %v1954_v3 = vld [vmem:[%s5035_s2 + $0x2] ss:$0 sm:$0xff] }
  0x1b   :  { %3343 = vmatprep.subr.bf16.mxu1 %v3784_v0  ;;  %v3395_v44 = vpack.c.bf16 %v1970_v43, %v1969_v42  ;;  %v1987_v8 = vld [vmem:[%s5033_s1 + $0x270] sm:$0xff]  ;;  %v1994_v15 = vld [vmem:[%s5033_s1 + $0x298] sm:$0xff]  ;;  %v1995_v17 = vld [vmem:[%s5033_s1 + $0x2a0] sm:$0xff] }
  0x1c   :  { %3321 = vmatpush3.bf16.msra.mxu0 %v3320_v39  ;;  %v1996_v18 = vld [vmem:[%s5033_s1 + $0x2a8] sm:$0xff]  ;;  %v1998_v21 = vld [vmem:[%s5033_s1 + $0x2b8] sm:$0xff]  ;;  %v1999_v23 = vld [vmem:[%s5033_s1 + $0x2c0] sm:$0xff] }
  0x1d   :  { %3322 = vmatprep.subr.bf16.mxu0 %v3784_v0  ;;  %v3428_v19 = vpack.c.bf16 %v1996_v18, %v1995_v17  ;;  %v2000_v24 = vld [vmem:[%s5033_s1 + $0x2c8] sm:$0xff]  ;;  %v2001_v26 = vld [vmem:[%s5033_s1 + $0x2d0] sm:$0xff]  ;;  %v2002_v27 = vld [vmem:[%s5033_s1 + $0x2d8] sm:$0xff] }
  0x1e   :  { %3345 = vmatpush3.bf16.msra.mxu1 %v3344_v46  ;;  %v1974_v46 = vld [vmem:[%s5033_s1 + $0x208] sm:$0xff]  ;;  %v2003_v29 = vld [vmem:[%s5033_s1 + $0x2e0] sm:$0xff]  ;;  %v2005_v36 = vld [vmem:[%s5033_s1 + $0x2f0] sm:$0xff] }
  0x1f   :  { %3346 = vmatprep.subr.bf16.mxu1 %v3784_v0  ;;  %v2004_v30 = vld [vmem:[%s5033_s1 + $0x2e8] sm:$0xff]  ;;  %v1972_v32 = vld [vmem:[%s5035_s2 + $0x3] ss:$0 sm:$0xff]  ;;  %v2012_v43 = vld [vmem:[%s5033_s1 + $0x318] sm:$0xff] }
  0x20   :  { %3324 = vmatpush3.bf16.msra.mxu0 %v3323_v45  ;;  %v1973_v45 = vld [vmem:[%s5033_s1 + $0x200] sm:$0xff]  ;;  %v2018_v52 = vld [vmem:[%s5033_s1 + $0x348] sm:$0xff] }
  0x21   :  { %3349 = vmatprep.subr.bf16.mxu0 %v3784_v0  ;;  %v3398_v48 = vpack.c.bf16 %v1974_v46, %v1973_v45  ;;  %v2013_v45 = vld [vmem:[%s5033_s1 + $0x320] sm:$0xff]  ;;  %v2014_v46 = vld [vmem:[%s5033_s1 + $0x328] sm:$0xff] }
  0x22   :  { %3348 = vmatpush3.bf16.msra.mxu1 %v3347_v50  ;;  %v2017_v51 = vld [vmem:[%s5033_s1 + $0x340] sm:$0xff]  ;;  %v2036_v18 = vld [vmem:[%s5033_s1 + $0x3c8] sm:$0xff] }
  0x23   :  { %2634 = vmatmul.mubr.f32.vlgmr.msra.gmra.mrb[0].mxu0 %v14_v47  ;;  %3373 = vmatprep.subr.bf16.mxu1 %v3784_v0  ;;  %v1975_v47 = vld [vmem:[%s5033_s1 + $0x210] sm:$0xff]  ;;  %v2035_v17 = vld [vmem:[%s5033_s1 + $0x3c0] sm:$0xff] }
  0x24   :  { %2703 = vmatprep.mubr.msk.f32.mxu0 %vm3785_vm0, %v3786_v4  ;;  %3351 = vmatpush3.bf16.msra.mxu0 %v3350_v54  ;;  %v3401_v50 = vpack.c.bf16 %v1976_v49, %v1975_v47  ;;  %v1979_v54 = vld [vmem:[%s5033_s1 + $0x230] sm:$0xff]  ;;  %v3452_v47 = vpack.c.bf16 %v2014_v46, %v2013_v45  ;;  %v2016_v49 = vld [vmem:[%s5033_s1 + $0x338] sm:$0xff]  ;;  %v2053_v45 = vld [vmem:[%s5033_s1 + $0x440] sm:$0xff] }
  0x25   :  { %3352 = vmatprep.subr.bf16.mxu0 %v3784_v0  ;;  %v2054_v46 = vld [vmem:[%s5033_s1 + $0x448] sm:$0xff] }
  0x28   :  { %3354 = vmatpush3.bf16.msra.mxu0 %v3353_v56  ;;  %v3407_v56 = vpack.c.bf16 %v1980_v55, %v1979_v54  ;;  %v2019_v54 = vld [vmem:[%s5033_s1 + $0x350] sm:$0xff]  ;;  %v2020_v55 = vld [vmem:[%s5033_s1 + $0x358] sm:$0xff] }
  0x29   :  { %3355 = vmatprep.subr.bf16.mxu0 %v3784_v0 }
  0x2c   :  { %3357 = vmatpush3.bf16.msra.mxu0 %v3356_v59  ;;  %v3410_v59 = vpack.c.bf16 %v1982_v58, %v1981_v57  ;;  %v2021_v57 = vld [vmem:[%s5033_s1 + $0x360] sm:$0xff]  ;;  %v2022_v58 = vld [vmem:[%s5033_s1 + $0x368] sm:$0xff] }
  0x2d   :  { %3358 = vmatprep.subr.bf16.mxu0 %v3784_v0 }
  0x30   :  { %3360 = vmatpush3.bf16.msra.mxu0 %v3359_v62  ;;  %v3413_v62 = vpack.c.bf16 %v1984_v61, %v1983_v60  ;;  %v1990_v60 = vld [vmem:[%s5035_s2 + $0x4] ss:$0 sm:$0xff] }
  0x31   :  { %3361 = vmatprep.subr.bf16.mxu0 %v3784_v0 }
  0x34   :  { %3363 = vmatpush3.bf16.msra.mxu0 %v3362_v2  ;;  %v3416_v2 = vpack.c.bf16 %v1986_v1, %v1985_v63  ;;  %v2023_v1 = vld [vmem:[%s5033_s1 + $0x370] sm:$0xff] }
  0x35   :  { %3364 = vmatprep.subr.bf16.mxu0 %v3784_v0 }
  0x38   :  { %3366 = vmatpush3.bf16.msra.mxu0 %v3365_v6 }
  0x39   :  { %3367 = vmatprep.subr.bf16.mxu0 %v3784_v0 }
  0x3c   :  { %3369 = vmatpush3.bf16.msra.mxu0 %v3368_v9  ;;  %v1988_v9 = vld [vmem:[%s5033_s1 + $0x278] sm:$0xff] }
  0x3d   :  { %3370 = vmatprep.subr.bf16.mxu0 %v3784_v0 }
  0x40   :  { %3372 = vmatpush3.bf16.msra.mxu0 %v3371_v16 }
  0x41   :  { %3397 = vmatprep.subr.bf16.mxu0 %v3784_v0 }
  0xf6   :  { %v104_v11 = vpop.f32.mrb[0].mxu0 }
  0xf7   :  { %v105_v12 = vadd.f32 %v1918_v10, %v104_v11  ;;  %v2635_v13 = vpop.f32.mrb[1].mxu0  ;;  %v3419_v10 = vpack.c.bf16 %v1988_v9, %v1987_v8  ;;  %v1991_v11 = vld [vmem:[%s5033_s1 + $0x280] sm:$0xff]  ;;  %v2030_v9 = vld [vmem:[%s5033_s1 + $0x398] sm:$0xff] }
  0xf8   :  { %v1993_v13 = vld [vmem:[%s5033_s1 + $0x290] sm:$0xff] }
  0xf9   :  { %2669 = vmatmul.mubr.f32.vlgmr.msra.gmra.mrb[0].mxu1 %v105_v12  ;;  %v1992_v12 = vld [vmem:[%s5033_s1 + $0x288] sm:$0xff]  ;;  %v3425_v16 = vpack.c.bf16 %v1994_v15, %v1993_v13  ;;  %v2034_v15 = vld [vmem:[%s5033_s1 + $0x3b8] sm:$0xff] }
  0xfa   :  { %2738 = vmatprep.mubr.msk.f32.mxu1 %vm3785_vm0, %v3786_v4  ;;  %3375 = vmatpush3.bf16.msra.mxu1 %v3374_v20  ;;  %v3422_v14 = vpack.c.bf16 %v1992_v12, %v1991_v11  ;;  %v1997_v20 = vld [vmem:[%s5033_s1 + $0x2b0] sm:$0xff]  ;;  %v2031_v11 = vld [vmem:[%s5033_s1 + $0x3a0] sm:$0xff]  ;;  %v2032_v12 = vld [vmem:[%s5033_s1 + $0x3a8] sm:$0xff] }
  0xfb   :  { %3376 = vmatprep.subr.bf16.mxu1 %v3784_v0  ;;  %v3476_v13 = vpack.c.bf16 %v2032_v12, %v2031_v11  ;;  %v2071_v11 = vld [vmem:[%s5033_s1 + $0x4c0] sm:$0xff]  ;;  %v2072_v12 = vld [vmem:[%s5033_s1 + $0x4c8] sm:$0xff] }
  0xfe   :  { %3378 = vmatpush3.bf16.msra.mxu1 %v3377_v22  ;;  %v3431_v22 = vpack.c.bf16 %v1998_v21, %v1997_v20  ;;  %v2037_v20 = vld [vmem:[%s5033_s1 + $0x3d0] sm:$0xff]  ;;  %v2038_v21 = vld [vmem:[%s5033_s1 + $0x3d8] sm:$0xff] }
  0xff   :  { %3379 = vmatprep.subr.bf16.mxu1 %v3784_v0 }
 0x102   :  { %3381 = vmatpush3.bf16.msra.mxu1 %v3380_v25  ;;  %v3434_v25 = vpack.c.bf16 %v2000_v24, %v1999_v23  ;;  %v2039_v23 = vld [vmem:[%s5033_s1 + $0x3e0] sm:$0xff]  ;;  %v2040_v24 = vld [vmem:[%s5033_s1 + $0x3e8] sm:$0xff] }
 0x103   :  { %3382 = vmatprep.subr.bf16.mxu1 %v3784_v0 }
 0x106   :  { %3384 = vmatpush3.bf16.msra.mxu1 %v3383_v28  ;;  %v3437_v28 = vpack.c.bf16 %v2002_v27, %v2001_v26  ;;  %v2008_v26 = vld [vmem:[%s5035_s2 + $0x5] ss:$0 sm:$0xff] }
 0x107   :  { %3385 = vmatprep.subr.bf16.mxu1 %v3784_v0 }
 0x10a   :  { %3387 = vmatpush3.bf16.msra.mxu1 %v3386_v31  ;;  %v3440_v31 = vpack.c.bf16 %v2004_v30, %v2003_v29  ;;  %v2041_v30 = vld [vmem:[%s5033_s1 + $0x3f0] sm:$0xff] }
 0x10b   :  { %3388 = vmatprep.subr.bf16.mxu1 %v3784_v0 }
 0x10e   :  { %3390 = vmatpush3.bf16.msra.mxu1 %v3389_v34 }
 0x10f   :  { %3391 = vmatprep.subr.bf16.mxu1 %v3784_v0 }
 0x112   :  { %3393 = vmatpush3.bf16.msra.mxu1 %v3392_v37  ;;  %v2006_v37 = vld [vmem:[%s5033_s1 + $0x2f8] sm:$0xff] }
 0x113   :  { %3394 = vmatprep.subr.bf16.mxu1 %v3784_v0 }
 0x116   :  { %3396 = vmatpush3.bf16.msra.mxu1 %v3395_v44 }
 0x117   :  { %3421 = vmatprep.subr.bf16.mxu1 %v3784_v0 }
 0x1cc   :  { %v199_v39 = vpop.f32.mrb[0].mxu1 }
 0x1cd   :  { %v200_v40 = vadd.f32 %v1936_v38, %v199_v39  ;;  %v2670_v41 = vpop.f32.mrb[1].mxu1  ;;  %v3443_v38 = vpack.c.bf16 %v2006_v37, %v2005_v36  ;;  %v2009_v39 = vld [vmem:[%s5033_s1 + $0x300] sm:$0xff]  ;;  %v2048_v37 = vld [vmem:[%s5033_s1 + $0x418] sm:$0xff] }
 0x1ce   :  { %v2011_v41 = vld [vmem:[%s5033_s1 + $0x310] sm:$0xff] }
 0x1cf   :  { %2704 = vmatmul.mubr.f32.vlgmr.msra.gmra.mrb[2].mxu0 %v200_v40  ;;  %v2010_v40 = vld [vmem:[%s5033_s1 + $0x308] sm:$0xff]  ;;  %v3449_v44 = vpack.c.bf16 %v2012_v43, %v2011_v41  ;;  %v2052_v43 = vld [vmem:[%s5033_s1 + $0x438] sm:$0xff] }
 0x1d0   :  { %2773 = vmatprep.mubr.msk.f32.mxu0 %vm3785_vm0, %v3786_v4  ;;  %3399 = vmatpush3.bf16.msra.mxu0 %v3398_v48  ;;  %v3446_v42 = vpack.c.bf16 %v2010_v40, %v2009_v39  ;;  %v2015_v48 = vld [vmem:[%s5033_s1 + $0x330] sm:$0xff]  ;;  %v2049_v39 = vld [vmem:[%s5033_s1 + $0x420] sm:$0xff]  ;;  %v2050_v40 = vld [vmem:[%s5033_s1 + $0x428] sm:$0xff] }
 0x1d1   :  { %3400 = vmatprep.subr.bf16.mxu0 %v3784_v0  ;;  %v3500_v41 = vpack.c.bf16 %v2050_v40, %v2049_v39  ;;  %v2089_v39 = vld [vmem:[%s5033_s1 + $0x540] sm:$0xff]  ;;  %v2090_v40 = vld [vmem:[%s5033_s1 + $0x548] sm:$0xff] }
 0x1d4   :  { %3402 = vmatpush3.bf16.msra.mxu0 %v3401_v50  ;;  %v3455_v50 = vpack.c.bf16 %v2016_v49, %v2015_v48  ;;  %v2055_v48 = vld [vmem:[%s5033_s1 + $0x450] sm:$0xff]  ;;  %v2056_v49 = vld [vmem:[%s5033_s1 + $0x458] sm:$0xff] }
 0x1d5   :  { %3403 = vmatprep.subr.bf16.mxu0 %v3784_v0 }
 0x1d8   :  { %3405 = vmatpush3.bf16.msra.mxu0 %v3404_v53  ;;  %v3458_v53 = vpack.c.bf16 %v2018_v52, %v2017_v51  ;;  %v2057_v51 = vld [vmem:[%s5033_s1 + $0x460] sm:$0xff]  ;;  %v2058_v52 = vld [vmem:[%s5033_s1 + $0x468] sm:$0xff] }
 0x1d9   :  { %3406 = vmatprep.subr.bf16.mxu0 %v3784_v0 }
 0x1dc   :  { %3408 = vmatpush3.bf16.msra.mxu0 %v3407_v56  ;;  %v3461_v56 = vpack.c.bf16 %v2020_v55, %v2019_v54  ;;  %v2026_v54 = vld [vmem:[%s5035_s2 + $0x6] ss:$0 sm:$0xff] }
 0x1dd   :  { %3409 = vmatprep.subr.bf16.mxu0 %v3784_v0 }
 0x1e0   :  { %3411 = vmatpush3.bf16.msra.mxu0 %v3410_v59  ;;  %v3464_v59 = vpack.c.bf16 %v2022_v58, %v2021_v57  ;;  %v2059_v58 = vld [vmem:[%s5033_s1 + $0x470] sm:$0xff] }
 0x1e1   :  { %3412 = vmatprep.subr.bf16.mxu0 %v3784_v0 }
 0x1e4   :  { %3414 = vmatpush3.bf16.msra.mxu0 %v3413_v62 }
 0x1e5   :  { %3415 = vmatprep.subr.bf16.mxu0 %v3784_v0 }
 0x1e8   :  { %3417 = vmatpush3.bf16.msra.mxu0 %v3416_v2  ;;  %v2024_v2 = vld [vmem:[%s5033_s1 + $0x378] sm:$0xff] }
 0x1e9   :  { %3418 = vmatprep.subr.bf16.mxu0 %v3784_v0 }
 0x1ec   :  { %3420 = vmatpush3.bf16.msra.mxu0 %v3419_v10 }
 0x1ed   :  { %3445 = vmatprep.subr.bf16.mxu0 %v3784_v0 }
 0x2a2   :  { %v294_v5 = vpop.f32.mrb[2].mxu0 }
 0x2a3   :  { %v295_v6 = vadd.f32 %v1954_v3, %v294_v5  ;;  %v2705_v7 = vpop.f32.mrb[3].mxu0  ;;  %v3467_v3 = vpack.c.bf16 %v2024_v2, %v2023_v1  ;;  %v2027_v5 = vld [vmem:[%s5033_s1 + $0x380] sm:$0xff]  ;;  %v2066_v2 = vld [vmem:[%s5033_s1 + $0x498] sm:$0xff] }
 0x2a4   :  { %v2029_v7 = vld [vmem:[%s5033_s1 + $0x390] sm:$0xff] }
 0x2a5   :  { %2739 = vmatmul.mubr.f32.vlgmr.msra.gmra.mrb[2].mxu1 %v295_v6  ;;  %v2028_v6 = vld [vmem:[%s5033_s1 + $0x388] sm:$0xff]  ;;  %v3473_v10 = vpack.c.bf16 %v2030_v9, %v2029_v7  ;;  %v2070_v9 = vld [vmem:[%s5033_s1 + $0x4b8] sm:$0xff] }
 0x2a6   :  { %2808 = vmatprep.mubr.msk.f32.mxu1 %vm3785_vm0, %v3786_v4  ;;  %3423 = vmatpush3.bf16.msra.mxu1 %v3422_v14  ;;  %v3470_v8 = vpack.c.bf16 %v2028_v6, %v2027_v5  ;;  %v2033_v14 = vld [vmem:[%s5033_s1 + $0x3b0] sm:$0xff]  ;;  %v2067_v5 = vld [vmem:[%s5033_s1 + $0x4a0] sm:$0xff]  ;;  %v2068_v6 = vld [vmem:[%s5033_s1 + $0x4a8] sm:$0xff] }
 0x2a7   :  { %3424 = vmatprep.subr.bf16.mxu1 %v3784_v0  ;;  %v3524_v7 = vpack.c.bf16 %v2068_v6, %v2067_v5  ;;  %v2107_v5 = vld [vmem:[%s5033_s1 + $0x5c0] sm:$0xff]  ;;  %v2108_v6 = vld [vmem:[%s5033_s1 + $0x5c8] sm:$0xff] }
 0x2aa   :  { %3426 = vmatpush3.bf16.msra.mxu1 %v3425_v16  ;;  %v3479_v16 = vpack.c.bf16 %v2034_v15, %v2033_v14  ;;  %v2073_v14 = vld [vmem:[%s5033_s1 + $0x4d0] sm:$0xff]  ;;  %v2074_v15 = vld [vmem:[%s5033_s1 + $0x4d8] sm:$0xff] }
 0x2ab   :  { %3427 = vmatprep.subr.bf16.mxu1 %v3784_v0 }
 0x2ae   :  { %3429 = vmatpush3.bf16.msra.mxu1 %v3428_v19  ;;  %v3482_v19 = vpack.c.bf16 %v2036_v18, %v2035_v17  ;;  %v2075_v17 = vld [vmem:[%s5033_s1 + $0x4e0] sm:$0xff]  ;;  %v2076_v18 = vld [vmem:[%s5033_s1 + $0x4e8] sm:$0xff] }
 0x2af   :  { %3430 = vmatprep.subr.bf16.mxu1 %v3784_v0 }
 0x2b2   :  { %3432 = vmatpush3.bf16.msra.mxu1 %v3431_v22  ;;  %v3485_v22 = vpack.c.bf16 %v2038_v21, %v2037_v20  ;;  %v2044_v20 = vld [vmem:[%s5035_s2 + $0x7] ss:$0 sm:$0xff] }
 0x2b3   :  { %3433 = vmatprep.subr.bf16.mxu1 %v3784_v0 }
 0x2b6   :  { %3435 = vmatpush3.bf16.msra.mxu1 %v3434_v25  ;;  %v3488_v25 = vpack.c.bf16 %v2040_v24, %v2039_v23  ;;  %v2077_v24 = vld [vmem:[%s5033_s1 + $0x4f0] sm:$0xff] }
 0x2b7   :  { %3436 = vmatprep.subr.bf16.mxu1 %v3784_v0 }
 0x2ba   :  { %3438 = vmatpush3.bf16.msra.mxu1 %v3437_v28 }
 0x2bb   :  { %3439 = vmatprep.subr.bf16.mxu1 %v3784_v0 }
 0x2be   :  { %3441 = vmatpush3.bf16.msra.mxu1 %v3440_v31  ;;  %v2042_v31 = vld [vmem:[%s5033_s1 + $0x3f8] sm:$0xff] }
 0x2bf   :  { %3442 = vmatprep.subr.bf16.mxu1 %v3784_v0 }
 0x2c2   :  { %3444 = vmatpush3.bf16.msra.mxu1 %v3443_v38 }
 0x2c3   :  { %3469 = vmatprep.subr.bf16.mxu1 %v3784_v0 }
 0x378   :  { %v389_v33 = vpop.f32.mrb[2].mxu1 }
 0x379   :  { %v390_v34 = vadd.f32 %v1972_v32, %v389_v33  ;;  %v2740_v35 = vpop.f32.mrb[3].mxu1  ;;  %v3491_v32 = vpack.c.bf16 %v2042_v31, %v2041_v30  ;;  %v2045_v33 = vld [vmem:[%s5033_s1 + $0x400] sm:$0xff]  ;;  %v2084_v31 = vld [vmem:[%s5033_s1 + $0x518] sm:$0xff] }
 0x37a   :  { %v2047_v35 = vld [vmem:[%s5033_s1 + $0x410] sm:$0xff] }
 0x37b   :  { %2774 = vmatmul.mubr.f32.vlgmr.msra.gmra.mrb[4].mxu0 %v390_v34  ;;  %v2046_v34 = vld [vmem:[%s5033_s1 + $0x408] sm:$0xff]  ;;  %v3497_v38 = vpack.c.bf16 %v2048_v37, %v2047_v35  ;;  %v2088_v37 = vld [vmem:[%s5033_s1 + $0x538] sm:$0xff] }
 0x37c   :  { %2843 = vmatprep.mubr.msk.f32.mxu0 %vm3785_vm0, %v3786_v4  ;;  %3447 = vmatpush3.bf16.msra.mxu0 %v3446_v42  ;;  %v3494_v36 = vpack.c.bf16 %v2046_v34, %v2045_v33  ;;  %v2051_v42 = vld [vmem:[%s5033_s1 + $0x430] sm:$0xff]  ;;  %v2085_v33 = vld [vmem:[%s5033_s1 + $0x520] sm:$0xff]  ;;  %v2086_v34 = vld [vmem:[%s5033_s1 + $0x528] sm:$0xff] }
 0x37d   :  { %3448 = vmatprep.subr.bf16.mxu0 %v3784_v0  ;;  %v3548_v35 = vpack.c.bf16 %v2086_v34, %v2085_v33  ;;  %v2125_v33 = vld [vmem:[%s5033_s1 + $0x640] sm:$0xff]  ;;  %v2126_v34 = vld [vmem:[%s5033_s1 + $0x648] sm:$0xff] }
 0x380   :  { %3450 = vmatpush3.bf16.msra.mxu0 %v3449_v44  ;;  %v3503_v44 = vpack.c.bf16 %v2052_v43, %v2051_v42  ;;  %v2091_v42 = vld [vmem:[%s5033_s1 + $0x550] sm:$0xff]  ;;  %v2092_v43 = vld [vmem:[%s5033_s1 + $0x558] sm:$0xff] }
 0x381   :  { %3451 = vmatprep.subr.bf16.mxu0 %v3784_v0 }
 0x384   :  { %3453 = vmatpush3.bf16.msra.mxu0 %v3452_v47  ;;  %v3506_v47 = vpack.c.bf16 %v2054_v46, %v2053_v45  ;;  %v2093_v45 = vld [vmem:[%s5033_s1 + $0x560] sm:$0xff]  ;;  %v2094_v46 = vld [vmem:[%s5033_s1 + $0x568] sm:$0xff] }
 0x385   :  { %3454 = vmatprep.subr.bf16.mxu0 %v3784_v0 }
 0x388   :  { %3456 = vmatpush3.bf16.msra.mxu0 %v3455_v50  ;;  %v3509_v50 = vpack.c.bf16 %v2056_v49, %v2055_v48  ;;  %v2062_v48 = vld [vmem:[%s5035_s2 + $0x8] ss:$0 sm:$0xff] }
 0x389   :  { %3457 = vmatprep.subr.bf16.mxu0 %v3784_v0 }
 0x38c   :  { %3459 = vmatpush3.bf16.msra.mxu0 %v3458_v53  ;;  %v3512_v53 = vpack.c.bf16 %v2058_v52, %v2057_v51  ;;  %v2095_v52 = vld [vmem:[%s5033_s1 + $0x570] sm:$0xff] }
 0x38d   :  { %3460 = vmatprep.subr.bf16.mxu0 %v3784_v0 }
 0x390   :  { %3462 = vmatpush3.bf16.msra.mxu0 %v3461_v56 }
 0x391   :  { %3463 = vmatprep.subr.bf16.mxu0 %v3784_v0 }
 0x394   :  { %3465 = vmatpush3.bf16.msra.mxu0 %v3464_v59  ;;  %v2060_v59 = vld [vmem:[%s5033_s1 + $0x478] sm:$0xff] }
 0x395   :  { %3466 = vmatprep.subr.bf16.mxu0 %v3784_v0 }
 0x398   :  { %3468 = vmatpush3.bf16.msra.mxu0 %v3467_v3 }
 0x399   :  { %3493 = vmatprep.subr.bf16.mxu0 %v3784_v0 }
 0x44e   :  { %v484_v61 = vpop.f32.mrb[4].mxu0 }
 0x44f   :  { %v485_v62 = vadd.f32 %v1990_v60, %v484_v61  ;;  %v2775_v63 = vpop.f32.mrb[5].mxu0  ;;  %v3515_v60 = vpack.c.bf16 %v2060_v59, %v2059_v58  ;;  %v2063_v61 = vld [vmem:[%s5033_s1 + $0x480] sm:$0xff]  ;;  %v2102_v59 = vld [vmem:[%s5033_s1 + $0x598] sm:$0xff] }
 0x450   :  { %v2065_v63 = vld [vmem:[%s5033_s1 + $0x490] sm:$0xff] }
 0x451   :  { %2809 = vmatmul.mubr.f32.vlgmr.msra.gmra.mrb[4].mxu1 %v485_v62  ;;  %v2064_v62 = vld [vmem:[%s5033_s1 + $0x488] sm:$0xff]  ;;  %v3521_v3 = vpack.c.bf16 %v2066_v2, %v2065_v63  ;;  %v2106_v2 = vld [vmem:[%s5033_s1 + $0x5b8] sm:$0xff] }
 0x452   :  { %2878 = vmatprep.mubr.msk.f32.mxu1 %vm3785_vm0, %v3786_v4  ;;  %3471 = vmatpush3.bf16.msra.mxu1 %v3470_v8  ;;  %v3518_v1 = vpack.c.bf16 %v2064_v62, %v2063_v61  ;;  %v2069_v8 = vld [vmem:[%s5033_s1 + $0x4b0] sm:$0xff]  ;;  %v2103_v61 = vld [vmem:[%s5033_s1 + $0x5a0] sm:$0xff]  ;;  %v2104_v62 = vld [vmem:[%s5033_s1 + $0x5a8] sm:$0xff] }
 0x453   :  { %3472 = vmatprep.subr.bf16.mxu1 %v3784_v0  ;;  %v3572_v63 = vpack.c.bf16 %v2104_v62, %v2103_v61  ;;  %v2143_v61 = vld [vmem:[%s5033_s1 + $0x6c0] sm:$0xff]  ;;  %v2144_v62 = vld [vmem:[%s5033_s1 + $0x6c8] sm:$0xff] }
 0x456   :  { %3474 = vmatpush3.bf16.msra.mxu1 %v3473_v10  ;;  %v3527_v10 = vpack.c.bf16 %v2070_v9, %v2069_v8  ;;  %v2109_v8 = vld [vmem:[%s5033_s1 + $0x5d0] sm:$0xff]  ;;  %v2110_v9 = vld [vmem:[%s5033_s1 + $0x5d8] sm:$0xff] }
 0x457   :  { %3475 = vmatprep.subr.bf16.mxu1 %v3784_v0 }
 0x45a   :  { %3477 = vmatpush3.bf16.msra.mxu1 %v3476_v13  ;;  %v3530_v13 = vpack.c.bf16 %v2072_v12, %v2071_v11  ;;  %v2111_v11 = vld [vmem:[%s5033_s1 + $0x5e0] sm:$0xff]  ;;  %v2112_v12 = vld [vmem:[%s5033_s1 + $0x5e8] sm:$0xff] }
 0x45b   :  { %3478 = vmatprep.subr.bf16.mxu1 %v3784_v0 }
 0x45e   :  { %3480 = vmatpush3.bf16.msra.mxu1 %v3479_v16  ;;  %v3533_v16 = vpack.c.bf16 %v2074_v15, %v2073_v14  ;;  %v2080_v14 = vld [vmem:[%s5035_s2 + $0x9] ss:$0 sm:$0xff] }
 0x45f   :  { %3481 = vmatprep.subr.bf16.mxu1 %v3784_v0 }
 0x462   :  { %3483 = vmatpush3.bf16.msra.mxu1 %v3482_v19  ;;  %v3536_v19 = vpack.c.bf16 %v2076_v18, %v2075_v17  ;;  %v2113_v18 = vld [vmem:[%s5033_s1 + $0x5f0] sm:$0xff] }
 0x463   :  { %3484 = vmatprep.subr.bf16.mxu1 %v3784_v0 }
 0x466   :  { %3486 = vmatpush3.bf16.msra.mxu1 %v3485_v22 }
 0x467   :  { %3487 = vmatprep.subr.bf16.mxu1 %v3784_v0 }
 0x46a   :  { %3489 = vmatpush3.bf16.msra.mxu1 %v3488_v25  ;;  %v2078_v25 = vld [vmem:[%s5033_s1 + $0x4f8] sm:$0xff] }
 0x46b   :  { %3490 = vmatprep.subr.bf16.mxu1 %v3784_v0 }
 0x46e   :  { %3492 = vmatpush3.bf16.msra.mxu1 %v3491_v32 }
 0x46f   :  { %3517 = vmatprep.subr.bf16.mxu1 %v3784_v0 }
 0x524   :  { %v579_v27 = vpop.f32.mrb[4].mxu1 }
 0x525   :  { %v580_v28 = vadd.f32 %v2008_v26, %v579_v27  ;;  %v2810_v29 = vpop.f32.mrb[5].mxu1  ;;  %v3539_v26 = vpack.c.bf16 %v2078_v25, %v2077_v24  ;;  %v2081_v27 = vld [vmem:[%s5033_s1 + $0x500] sm:$0xff]  ;;  %v2120_v25 = vld [vmem:[%s5033_s1 + $0x618] sm:$0xff] }
 0x526   :  { %v2083_v29 = vld [vmem:[%s5033_s1 + $0x510] sm:$0xff] }
 0x527   :  { %2844 = vmatmul.mubr.f32.vlgmr.msra.gmra.mrb[6].mxu0 %v580_v28  ;;  %v2082_v28 = vld [vmem:[%s5033_s1 + $0x508] sm:$0xff]  ;;  %v3545_v32 = vpack.c.bf16 %v2084_v31, %v2083_v29  ;;  %v2124_v31 = vld [vmem:[%s5033_s1 + $0x638] sm:$0xff] }
 0x528   :  { %2913 = vmatprep.mubr.msk.f32.mxu0 %vm3785_vm0, %v3786_v4  ;;  %3495 = vmatpush3.bf16.msra.mxu0 %v3494_v36  ;;  %v3542_v30 = vpack.c.bf16 %v2082_v28, %v2081_v27  ;;  %v2087_v36 = vld [vmem:[%s5033_s1 + $0x530] sm:$0xff]  ;;  %v2121_v27 = vld [vmem:[%s5033_s1 + $0x620] sm:$0xff]  ;;  %v2122_v28 = vld [vmem:[%s5033_s1 + $0x628] sm:$0xff] }
 0x529   :  { %3496 = vmatprep.subr.bf16.mxu0 %v3784_v0  ;;  %v3596_v29 = vpack.c.bf16 %v2122_v28, %v2121_v27  ;;  %v2161_v27 = vld [vmem:[%s5033_s1 + $0x740] sm:$0xff]  ;;  %v2162_v28 = vld [vmem:[%s5033_s1 + $0x748] sm:$0xff] }
 0x52c   :  { %3498 = vmatpush3.bf16.msra.mxu0 %v3497_v38  ;;  %v3551_v38 = vpack.c.bf16 %v2088_v37, %v2087_v36  ;;  %v2127_v36 = vld [vmem:[%s5033_s1 + $0x650] sm:$0xff]  ;;  %v2128_v37 = vld [vmem:[%s5033_s1 + $0x658] sm:$0xff] }
 0x52d   :  { %3499 = vmatprep.subr.bf16.mxu0 %v3784_v0 }
 0x530   :  { %3501 = vmatpush3.bf16.msra.mxu0 %v3500_v41  ;;  %v3554_v41 = vpack.c.bf16 %v2090_v40, %v2089_v39  ;;  %v2129_v39 = vld [vmem:[%s5033_s1 + $0x660] sm:$0xff]  ;;  %v2130_v40 = vld [vmem:[%s5033_s1 + $0x668] sm:$0xff] }
 0x531   :  { %3502 = vmatprep.subr.bf16.mxu0 %v3784_v0 }
 0x534   :  { %3504 = vmatpush3.bf16.msra.mxu0 %v3503_v44  ;;  %v3557_v44 = vpack.c.bf16 %v2092_v43, %v2091_v42  ;;  %v2098_v42 = vld [vmem:[%s5035_s2 + $0xa] ss:$0 sm:$0xff] }
 0x535   :  { %3505 = vmatprep.subr.bf16.mxu0 %v3784_v0 }
 0x538   :  { %3507 = vmatpush3.bf16.msra.mxu0 %v3506_v47  ;;  %v3560_v47 = vpack.c.bf16 %v2094_v46, %v2093_v45  ;;  %v2131_v46 = vld [vmem:[%s5033_s1 + $0x670] sm:$0xff] }
 0x539   :  { %3508 = vmatprep.subr.bf16.mxu0 %v3784_v0 }
 0x53c   :  { %3510 = vmatpush3.bf16.msra.mxu0 %v3509_v50 }
 0x53d   :  { %3511 = vmatprep.subr.bf16.mxu0 %v3784_v0 }
 0x540   :  { %3513 = vmatpush3.bf16.msra.mxu0 %v3512_v53  ;;  %v2096_v53 = vld [vmem:[%s5033_s1 + $0x578] sm:$0xff] }
 0x541   :  { %3514 = vmatprep.subr.bf16.mxu0 %v3784_v0 }
 0x544   :  { %3516 = vmatpush3.bf16.msra.mxu0 %v3515_v60 }
 0x545   :  { %3541 = vmatprep.subr.bf16.mxu0 %v3784_v0 }
 0x5fa   :  { %v674_v55 = vpop.f32.mrb[6].mxu0 }
 0x5fb   :  { %v675_v56 = vadd.f32 %v2026_v54, %v674_v55  ;;  %v2845_v57 = vpop.f32.mrb[7].mxu0  ;;  %v3563_v54 = vpack.c.bf16 %v2096_v53, %v2095_v52  ;;  %v2099_v55 = vld [vmem:[%s5033_s1 + $0x580] sm:$0xff]  ;;  %v2138_v53 = vld [vmem:[%s5033_s1 + $0x698] sm:$0xff] }
 0x5fc   :  { %v2101_v57 = vld [vmem:[%s5033_s1 + $0x590] sm:$0xff] }
 0x5fd   :  { %2879 = vmatmul.mubr.f32.vlgmr.msra.gmra.mrb[6].mxu1 %v675_v56  ;;  %v2100_v56 = vld [vmem:[%s5033_s1 + $0x588] sm:$0xff]  ;;  %v3569_v60 = vpack.c.bf16 %v2102_v59, %v2101_v57  ;;  %v2142_v59 = vld [vmem:[%s5033_s1 + $0x6b8] sm:$0xff] }
 0x5fe   :  { %2948 = vmatprep.mubr.msk.f32.mxu1 %vm3785_vm0, %v3786_v4  ;;  %3519 = vmatpush3.bf16.msra.mxu1 %v3518_v1  ;;  %v3566_v58 = vpack.c.bf16 %v2100_v56, %v2099_v55  ;;  %v2105_v1 = vld [vmem:[%s5033_s1 + $0x5b0] sm:$0xff]  ;;  %v2139_v55 = vld [vmem:[%s5033_s1 + $0x6a0] sm:$0xff]  ;;  %v2140_v56 = vld [vmem:[%s5033_s1 + $0x6a8] sm:$0xff] }
 0x5ff   :  { %3520 = vmatprep.subr.bf16.mxu1 %v3784_v0  ;;  %v3620_v57 = vpack.c.bf16 %v2140_v56, %v2139_v55  ;;  %v2179_v55 = vld [vmem:[%s5033_s1 + $0x7c0] sm:$0xff]  ;;  %v2180_v56 = vld [vmem:[%s5033_s1 + $0x7c8] sm:$0xff] }
 0x602   :  { %3522 = vmatpush3.bf16.msra.mxu1 %v3521_v3  ;;  %v3575_v3 = vpack.c.bf16 %v2106_v2, %v2105_v1  ;;  %v2145_v1 = vld [vmem:[%s5033_s1 + $0x6d0] sm:$0xff]  ;;  %v2146_v2 = vld [vmem:[%s5033_s1 + $0x6d8] sm:$0xff] }
 0x603   :  { %3523 = vmatprep.subr.bf16.mxu1 %v3784_v0 }
 0x606   :  { %3525 = vmatpush3.bf16.msra.mxu1 %v3524_v7  ;;  %v3578_v7 = vpack.c.bf16 %v2108_v6, %v2107_v5  ;;  %v2147_v5 = vld [vmem:[%s5033_s1 + $0x6e0] sm:$0xff]  ;;  %v2148_v6 = vld [vmem:[%s5033_s1 + $0x6e8] sm:$0xff] }
 0x607   :  { %3526 = vmatprep.subr.bf16.mxu1 %v3784_v0 }
 0x60a   :  { %3528 = vmatpush3.bf16.msra.mxu1 %v3527_v10  ;;  %v3581_v10 = vpack.c.bf16 %v2110_v9, %v2109_v8  ;;  %v2116_v8 = vld [vmem:[%s5035_s2 + $0xb] ss:$0 sm:$0xff] }
 0x60b   :  { %3529 = vmatprep.subr.bf16.mxu1 %v3784_v0 }
 0x60e   :  { %3531 = vmatpush3.bf16.msra.mxu1 %v3530_v13  ;;  %v3584_v13 = vpack.c.bf16 %v2112_v12, %v2111_v11  ;;  %v2149_v12 = vld [vmem:[%s5033_s1 + $0x6f0] sm:$0xff] }
 0x60f   :  { %3532 = vmatprep.subr.bf16.mxu1 %v3784_v0 }
 0x612   :  { %3534 = vmatpush3.bf16.msra.mxu1 %v3533_v16 }
 0x613   :  { %3535 = vmatprep.subr.bf16.mxu1 %v3784_v0 }
 0x616   :  { %3537 = vmatpush3.bf16.msra.mxu1 %v3536_v19  ;;  %v2114_v19 = vld [vmem:[%s5033_s1 + $0x5f8] sm:$0xff] }
 0x617   :  { %3538 = vmatprep.subr.bf16.mxu1 %v3784_v0 }
 0x61a   :  { %3540 = vmatpush3.bf16.msra.mxu1 %v3539_v26 }
 0x61b   :  { %3565 = vmatprep.subr.bf16.mxu1 %v3784_v0 }
 0x6d0   :  { %v769_v21 = vpop.f32.mrb[6].mxu1 }
 0x6d1   :  { %v770_v22 = vadd.f32 %v2044_v20, %v769_v21  ;;  %v2880_v23 = vpop.f32.mrb[7].mxu1  ;;  %v3587_v20 = vpack.c.bf16 %v2114_v19, %v2113_v18  ;;  %v2117_v21 = vld [vmem:[%s5033_s1 + $0x600] sm:$0xff]  ;;  %v2156_v19 = vld [vmem:[%s5033_s1 + $0x718] sm:$0xff] }
 0x6d2   :  { %v2119_v23 = vld [vmem:[%s5033_s1 + $0x610] sm:$0xff] }
 0x6d3   :  { %2914 = vmatmul.mubr.f32.vlgmr.msra.gmra.mrb[8].mxu0 %v770_v22  ;;  %v2118_v22 = vld [vmem:[%s5033_s1 + $0x608] sm:$0xff]  ;;  %v3593_v26 = vpack.c.bf16 %v2120_v25, %v2119_v23  ;;  %v2160_v25 = vld [vmem:[%s5033_s1 + $0x738] sm:$0xff] }
 0x6d4   :  { %2983 = vmatprep.mubr.msk.f32.mxu0 %vm3785_vm0, %v3786_v4  ;;  %3543 = vmatpush3.bf16.msra.mxu0 %v3542_v30  ;;  %v3590_v24 = vpack.c.bf16 %v2118_v22, %v2117_v21  ;;  %v2123_v30 = vld [vmem:[%s5033_s1 + $0x630] sm:$0xff]  ;;  %v2157_v21 = vld [vmem:[%s5033_s1 + $0x720] sm:$0xff]  ;;  %v2158_v22 = vld [vmem:[%s5033_s1 + $0x728] sm:$0xff] }
 0x6d5   :  { %3544 = vmatprep.subr.bf16.mxu0 %v3784_v0  ;;  %v3644_v23 = vpack.c.bf16 %v2158_v22, %v2157_v21  ;;  %v2197_v21 = vld [vmem:[%s5033_s1 + $0x840] sm:$0xff]  ;;  %v2198_v22 = vld [vmem:[%s5033_s1 + $0x848] sm:$0xff] }
 0x6d8   :  { %3546 = vmatpush3.bf16.msra.mxu0 %v3545_v32  ;;  %v3599_v32 = vpack.c.bf16 %v2124_v31, %v2123_v30  ;;  %v2163_v30 = vld [vmem:[%s5033_s1 + $0x750] sm:$0xff]  ;;  %v2164_v31 = vld [vmem:[%s5033_s1 + $0x758] sm:$0xff] }
 0x6d9   :  { %3547 = vmatprep.subr.bf16.mxu0 %v3784_v0 }
 0x6dc   :  { %3549 = vmatpush3.bf16.msra.mxu0 %v3548_v35  ;;  %v3602_v35 = vpack.c.bf16 %v2126_v34, %v2125_v33  ;;  %v2165_v33 = vld [vmem:[%s5033_s1 + $0x760] sm:$0xff]  ;;  %v2166_v34 = vld [vmem:[%s5033_s1 + $0x768] sm:$0xff] }
 0x6dd   :  { %3550 = vmatprep.subr.bf16.mxu0 %v3784_v0 }
 0x6e0   :  { %3552 = vmatpush3.bf16.msra.mxu0 %v3551_v38  ;;  %v3605_v38 = vpack.c.bf16 %v2128_v37, %v2127_v36  ;;  %v2134_v36 = vld [vmem:[%s5035_s2 + $0xc] ss:$0 sm:$0xff] }
 0x6e1   :  { %3553 = vmatprep.subr.bf16.mxu0 %v3784_v0 }
 0x6e4   :  { %3555 = vmatpush3.bf16.msra.mxu0 %v3554_v41  ;;  %v3608_v41 = vpack.c.bf16 %v2130_v40, %v2129_v39  ;;  %v2167_v40 = vld [vmem:[%s5033_s1 + $0x770] sm:$0xff] }
 0x6e5   :  { %3556 = vmatprep.subr.bf16.mxu0 %v3784_v0 }
 0x6e8   :  { %3558 = vmatpush3.bf16.msra.mxu0 %v3557_v44 }
 0x6e9   :  { %3559 = vmatprep.subr.bf16.mxu0 %v3784_v0 }
 0x6ec   :  { %3561 = vmatpush3.bf16.msra.mxu0 %v3560_v47  ;;  %v2132_v47 = vld [vmem:[%s5033_s1 + $0x678] sm:$0xff] }
 0x6ed   :  { %3562 = vmatprep.subr.bf16.mxu0 %v3784_v0 }
 0x6f0   :  { %3564 = vmatpush3.bf16.msra.mxu0 %v3563_v54 }
 0x6f1   :  { %3589 = vmatprep.subr.bf16.mxu0 %v3784_v0 }
 0x7a6   :  { %v864_v49 = vpop.f32.mrb[8].mxu0 }
 0x7a7   :  { %v865_v50 = vadd.f32 %v2062_v48, %v864_v49  ;;  %v2915_v51 = vpop.f32.mrb[9].mxu0  ;;  %v3611_v48 = vpack.c.bf16 %v2132_v47, %v2131_v46  ;;  %v2135_v49 = vld [vmem:[%s5033_s1 + $0x680] sm:$0xff]  ;;  %v2174_v47 = vld [vmem:[%s5033_s1 + $0x798] sm:$0xff] }
 0x7a8   :  { %v2137_v51 = vld [vmem:[%s5033_s1 + $0x690] sm:$0xff] }
 0x7a9   :  { %2949 = vmatmul.mubr.f32.vlgmr.msra.gmra.mrb[8].mxu1 %v865_v50  ;;  %v2136_v50 = vld [vmem:[%s5033_s1 + $0x688] sm:$0xff]  ;;  %v3617_v54 = vpack.c.bf16 %v2138_v53, %v2137_v51  ;;  %v2178_v53 = vld [vmem:[%s5033_s1 + $0x7b8] sm:$0xff] }
 0x7aa   :  { %3018 = vmatprep.mubr.msk.f32.mxu1 %vm3785_vm0, %v3786_v4  ;;  %3567 = vmatpush3.bf16.msra.mxu1 %v3566_v58  ;;  %v3614_v52 = vpack.c.bf16 %v2136_v50, %v2135_v49  ;;  %v2141_v58 = vld [vmem:[%s5033_s1 + $0x6b0] sm:$0xff]  ;;  %v2175_v49 = vld [vmem:[%s5033_s1 + $0x7a0] sm:$0xff]  ;;  %v2176_v50 = vld [vmem:[%s5033_s1 + $0x7a8] sm:$0xff] }
 0x7ab   :  { %3568 = vmatprep.subr.bf16.mxu1 %v3784_v0  ;;  %v3668_v51 = vpack.c.bf16 %v2176_v50, %v2175_v49  ;;  %v2215_v49 = vld [vmem:[%s5033_s1 + $0x8c0] sm:$0xff]  ;;  %v2216_v50 = vld [vmem:[%s5033_s1 + $0x8c8] sm:$0xff] }
 0x7ae   :  { %3570 = vmatpush3.bf16.msra.mxu1 %v3569_v60  ;;  %v3623_v60 = vpack.c.bf16 %v2142_v59, %v2141_v58  ;;  %v2181_v58 = vld [vmem:[%s5033_s1 + $0x7d0] sm:$0xff]  ;;  %v2182_v59 = vld [vmem:[%s5033_s1 + $0x7d8] sm:$0xff] }
 0x7af   :  { %3571 = vmatprep.subr.bf16.mxu1 %v3784_v0 }
 0x7b2   :  { %3573 = vmatpush3.bf16.msra.mxu1 %v3572_v63  ;;  %v3626_v63 = vpack.c.bf16 %v2144_v62, %v2143_v61  ;;  %v2183_v61 = vld [vmem:[%s5033_s1 + $0x7e0] sm:$0xff]  ;;  %v2184_v62 = vld [vmem:[%s5033_s1 + $0x7e8] sm:$0xff] }
 0x7b3   :  { %3574 = vmatprep.subr.bf16.mxu1 %v3784_v0 }
 0x7b6   :  { %3576 = vmatpush3.bf16.msra.mxu1 %v3575_v3  ;;  %v3629_v3 = vpack.c.bf16 %v2146_v2, %v2145_v1  ;;  %v2152_v1 = vld [vmem:[%s5035_s2 + $0xd] ss:$0 sm:$0xff] }
 0x7b7   :  { %3577 = vmatprep.subr.bf16.mxu1 %v3784_v0 }
 0x7ba   :  { %3579 = vmatpush3.bf16.msra.mxu1 %v3578_v7  ;;  %v3632_v7 = vpack.c.bf16 %v2148_v6, %v2147_v5  ;;  %v2185_v6 = vld [vmem:[%s5033_s1 + $0x7f0] sm:$0xff] }
 0x7bb   :  { %3580 = vmatprep.subr.bf16.mxu1 %v3784_v0 }
 0x7be   :  { %3582 = vmatpush3.bf16.msra.mxu1 %v3581_v10 }
 0x7bf   :  { %3583 = vmatprep.subr.bf16.mxu1 %v3784_v0 }
 0x7c2   :  { %3585 = vmatpush3.bf16.msra.mxu1 %v3584_v13  ;;  %v2150_v13 = vld [vmem:[%s5033_s1 + $0x6f8] sm:$0xff] }
 0x7c3   :  { %3586 = vmatprep.subr.bf16.mxu1 %v3784_v0 }
 0x7c6   :  { %3588 = vmatpush3.bf16.msra.mxu1 %v3587_v20 }
 0x7c7   :  { %3613 = vmatprep.subr.bf16.mxu1 %v3784_v0 }
 0x87c   :  { %v959_v15 = vpop.f32.mrb[8].mxu1 }
 0x87d   :  { %v960_v16 = vadd.f32 %v2080_v14, %v959_v15  ;;  %v2950_v17 = vpop.f32.mrb[9].mxu1  ;;  %v3635_v14 = vpack.c.bf16 %v2150_v13, %v2149_v12  ;;  %v2153_v15 = vld [vmem:[%s5033_s1 + $0x700] sm:$0xff]  ;;  %v2192_v13 = vld [vmem:[%s5033_s1 + $0x818] sm:$0xff] }
 0x87e   :  { %v2155_v17 = vld [vmem:[%s5033_s1 + $0x710] sm:$0xff] }
 0x87f   :  { %2984 = vmatmul.mubr.f32.vlgmr.msra.gmra.mrb[10].mxu0 %v960_v16  ;;  %v2154_v16 = vld [vmem:[%s5033_s1 + $0x708] sm:$0xff]  ;;  %v3641_v20 = vpack.c.bf16 %v2156_v19, %v2155_v17  ;;  %v2196_v19 = vld [vmem:[%s5033_s1 + $0x838] sm:$0xff] }
 0x880   :  { %3053 = vmatprep.mubr.msk.f32.mxu0 %vm3785_vm0, %v3786_v4  ;;  %3591 = vmatpush3.bf16.msra.mxu0 %v3590_v24  ;;  %v3638_v18 = vpack.c.bf16 %v2154_v16, %v2153_v15  ;;  %v2159_v24 = vld [vmem:[%s5033_s1 + $0x730] sm:$0xff]  ;;  %v2193_v15 = vld [vmem:[%s5033_s1 + $0x820] sm:$0xff]  ;;  %v2194_v16 = vld [vmem:[%s5033_s1 + $0x828] sm:$0xff] }
 0x881   :  { %3592 = vmatprep.subr.bf16.mxu0 %v3784_v0  ;;  %v3692_v17 = vpack.c.bf16 %v2194_v16, %v2193_v15  ;;  %v2233_v15 = vld [vmem:[%s5033_s1 + $0x940] sm:$0xff]  ;;  %v2234_v16 = vld [vmem:[%s5033_s1 + $0x948] sm:$0xff] }
 0x884   :  { %3594 = vmatpush3.bf16.msra.mxu0 %v3593_v26  ;;  %v3647_v26 = vpack.c.bf16 %v2160_v25, %v2159_v24  ;;  %v2199_v24 = vld [vmem:[%s5033_s1 + $0x850] sm:$0xff]  ;;  %v2200_v25 = vld [vmem:[%s5033_s1 + $0x858] sm:$0xff] }
 0x885   :  { %3595 = vmatprep.subr.bf16.mxu0 %v3784_v0 }
 0x888   :  { %3597 = vmatpush3.bf16.msra.mxu0 %v3596_v29  ;;  %v3650_v29 = vpack.c.bf16 %v2162_v28, %v2161_v27  ;;  %v2201_v27 = vld [vmem:[%s5033_s1 + $0x860] sm:$0xff]  ;;  %v2202_v28 = vld [vmem:[%s5033_s1 + $0x868] sm:$0xff] }
 0x889   :  { %3598 = vmatprep.subr.bf16.mxu0 %v3784_v0 }
 0x88c   :  { %3600 = vmatpush3.bf16.msra.mxu0 %v3599_v32  ;;  %v3653_v32 = vpack.c.bf16 %v2164_v31, %v2163_v30  ;;  %v2170_v30 = vld [vmem:[%s5035_s2 + $0xe] ss:$0 sm:$0xff] }
 0x88d   :  { %3601 = vmatprep.subr.bf16.mxu0 %v3784_v0 }
 0x890   :  { %3603 = vmatpush3.bf16.msra.mxu0 %v3602_v35  ;;  %v3656_v35 = vpack.c.bf16 %v2166_v34, %v2165_v33  ;;  %v2203_v34 = vld [vmem:[%s5033_s1 + $0x870] sm:$0xff] }
 0x891   :  { %3604 = vmatprep.subr.bf16.mxu0 %v3784_v0 }
 0x894   :  { %3606 = vmatpush3.bf16.msra.mxu0 %v3605_v38 }
 0x895   :  { %3607 = vmatprep.subr.bf16.mxu0 %v3784_v0 }
 0x898   :  { %3609 = vmatpush3.bf16.msra.mxu0 %v3608_v41  ;;  %v2168_v41 = vld [vmem:[%s5033_s1 + $0x778] sm:$0xff] }
 0x899   :  { %3610 = vmatprep.subr.bf16.mxu0 %v3784_v0 }
 0x89c   :  { %3612 = vmatpush3.bf16.msra.mxu0 %v3611_v48 }
 0x89d   :  { %3637 = vmatprep.subr.bf16.mxu0 %v3784_v0 }
 0x952   :  { %v1054_v43 = vpop.f32.mrb[10].mxu0 }
 0x953   :  { %v1055_v44 = vadd.f32 %v2098_v42, %v1054_v43  ;;  %v2985_v45 = vpop.f32.mrb[11].mxu0  ;;  %v3659_v42 = vpack.c.bf16 %v2168_v41, %v2167_v40  ;;  %v2171_v43 = vld [vmem:[%s5033_s1 + $0x780] sm:$0xff]  ;;  %v2210_v41 = vld [vmem:[%s5033_s1 + $0x898] sm:$0xff] }
 0x954   :  { %v2173_v45 = vld [vmem:[%s5033_s1 + $0x790] sm:$0xff] }
 0x955   :  { %3019 = vmatmul.mubr.f32.vlgmr.msra.gmra.mrb[10].mxu1 %v1055_v44  ;;  %v2172_v44 = vld [vmem:[%s5033_s1 + $0x788] sm:$0xff]  ;;  %v3665_v48 = vpack.c.bf16 %v2174_v47, %v2173_v45  ;;  %v2214_v47 = vld [vmem:[%s5033_s1 + $0x8b8] sm:$0xff] }
 0x956   :  { %3088 = vmatprep.mubr.msk.f32.mxu1 %vm3785_vm0, %v3786_v4  ;;  %3615 = vmatpush3.bf16.msra.mxu1 %v3614_v52  ;;  %v3662_v46 = vpack.c.bf16 %v2172_v44, %v2171_v43  ;;  %v2177_v52 = vld [vmem:[%s5033_s1 + $0x7b0] sm:$0xff]  ;;  %v2211_v43 = vld [vmem:[%s5033_s1 + $0x8a0] sm:$0xff]  ;;  %v2212_v44 = vld [vmem:[%s5033_s1 + $0x8a8] sm:$0xff] }
 0x957   :  { %3616 = vmatprep.subr.bf16.mxu1 %v3784_v0  ;;  %v3716_v45 = vpack.c.bf16 %v2212_v44, %v2211_v43  ;;  %v2252_v43 = vld [vmem:[%s5033_s1 + $0x9c8] sm:$0xff] }
 0x95a   :  { %3618 = vmatpush3.bf16.msra.mxu1 %v3617_v54  ;;  %v3671_v54 = vpack.c.bf16 %v2178_v53, %v2177_v52  ;;  %v2217_v52 = vld [vmem:[%s5033_s1 + $0x8d0] sm:$0xff]  ;;  %v2218_v53 = vld [vmem:[%s5033_s1 + $0x8d8] sm:$0xff] }
 0x95b   :  { %3619 = vmatprep.subr.bf16.mxu1 %v3784_v0 }
 0x95e   :  { %3621 = vmatpush3.bf16.msra.mxu1 %v3620_v57  ;;  %v3674_v57 = vpack.c.bf16 %v2180_v56, %v2179_v55  ;;  %v2219_v55 = vld [vmem:[%s5033_s1 + $0x8e0] sm:$0xff]  ;;  %v2220_v56 = vld [vmem:[%s5033_s1 + $0x8e8] sm:$0xff] }
 0x95f   :  { %3622 = vmatprep.subr.bf16.mxu1 %v3784_v0 }
 0x962   :  { %3624 = vmatpush3.bf16.msra.mxu1 %v3623_v60  ;;  %v3677_v60 = vpack.c.bf16 %v2182_v59, %v2181_v58  ;;  %v2188_v58 = vld [vmem:[%s5035_s2 + $0xf] ss:$0 sm:$0xff] }
 0x963   :  { %3625 = vmatprep.subr.bf16.mxu1 %v3784_v0 }
 0x966   :  { %3627 = vmatpush3.bf16.msra.mxu1 %v3626_v63  ;;  %v3680_v63 = vpack.c.bf16 %v2184_v62, %v2183_v61  ;;  %v2221_v62 = vld [vmem:[%s5033_s1 + $0x8f0] sm:$0xff] }
 0x967   :  { %3628 = vmatprep.subr.bf16.mxu1 %v3784_v0 }
 0x96a   :  { %3630 = vmatpush3.bf16.msra.mxu1 %v3629_v3 }
 0x96b   :  { %3631 = vmatprep.subr.bf16.mxu1 %v3784_v0 }
 0x96e   :  { %3633 = vmatpush3.bf16.msra.mxu1 %v3632_v7  ;;  %v2186_v7 = vld [vmem:[%s5033_s1 + $0x7f8] sm:$0xff] }
 0x96f   :  { %3634 = vmatprep.subr.bf16.mxu1 %v3784_v0 }
 0x972   :  { %3636 = vmatpush3.bf16.msra.mxu1 %v3635_v14 }
 0x973   :  { %3661 = vmatprep.subr.bf16.mxu1 %v3784_v0 }
 0xa28   :  { %v1149_v9 = vpop.f32.mrb[10].mxu1 }
 0xa29   :  { %v1150_v10 = vadd.f32 %v2116_v8, %v1149_v9  ;;  %v3020_v11 = vpop.f32.mrb[11].mxu1  ;;  %v3683_v8 = vpack.c.bf16 %v2186_v7, %v2185_v6  ;;  %v2189_v9 = vld [vmem:[%s5033_s1 + $0x800] sm:$0xff]  ;;  %v2228_v7 = vld [vmem:[%s5033_s1 + $0x918] sm:$0xff] }
 0xa2a   :  { %v2191_v11 = vld [vmem:[%s5033_s1 + $0x810] sm:$0xff] }
 0xa2b   :  { %3054 = vmatmul.mubr.f32.vlgmr.msra.gmra.mrb[12].mxu0 %v1150_v10  ;;  %v2190_v10 = vld [vmem:[%s5033_s1 + $0x808] sm:$0xff]  ;;  %v3689_v14 = vpack.c.bf16 %v2192_v13, %v2191_v11  ;;  %v2232_v13 = vld [vmem:[%s5033_s1 + $0x938] sm:$0xff] }
 0xa2c   :  { %3123 = vmatprep.mubr.msk.f32.mxu0 %vm3785_vm0, %v3786_v4  ;;  %3639 = vmatpush3.bf16.msra.mxu0 %v3638_v18  ;;  %v3686_v12 = vpack.c.bf16 %v2190_v10, %v2189_v9  ;;  %v2195_v18 = vld [vmem:[%s5033_s1 + $0x830] sm:$0xff]  ;;  %v2229_v9 = vld [vmem:[%s5033_s1 + $0x920] sm:$0xff]  ;;  %v2230_v10 = vld [vmem:[%s5033_s1 + $0x928] sm:$0xff] }
 0xa2d   :  { %3640 = vmatprep.subr.bf16.mxu0 %v3784_v0  ;;  %v3740_v11 = vpack.c.bf16 %v2230_v10, %v2229_v9 }
 0xa30   :  { %3642 = vmatpush3.bf16.msra.mxu0 %v3641_v20  ;;  %v3695_v20 = vpack.c.bf16 %v2196_v19, %v2195_v18  ;;  %v2235_v18 = vld [vmem:[%s5033_s1 + $0x950] sm:$0xff]  ;;  %v2236_v19 = vld [vmem:[%s5033_s1 + $0x958] sm:$0xff] }
 0xa31   :  { %3643 = vmatprep.subr.bf16.mxu0 %v3784_v0 }
 0xa34   :  { %3645 = vmatpush3.bf16.msra.mxu0 %v3644_v23  ;;  %v3698_v23 = vpack.c.bf16 %v2198_v22, %v2197_v21  ;;  %v2237_v21 = vld [vmem:[%s5033_s1 + $0x960] sm:$0xff]  ;;  %v2238_v22 = vld [vmem:[%s5033_s1 + $0x968] sm:$0xff] }
 0xa35   :  { %3646 = vmatprep.subr.bf16.mxu0 %v3784_v0 }
 0xa38   :  { %3648 = vmatpush3.bf16.msra.mxu0 %v3647_v26  ;;  %v3701_v26 = vpack.c.bf16 %v2200_v25, %v2199_v24  ;;  %v2206_v24 = vld [vmem:[%s5035_s2 + $0x10] ss:$0 sm:$0xff] }
 0xa39   :  { %3649 = vmatprep.subr.bf16.mxu0 %v3784_v0 }
 0xa3c   :  { %3651 = vmatpush3.bf16.msra.mxu0 %v3650_v29  ;;  %v3704_v29 = vpack.c.bf16 %v2202_v28, %v2201_v27  ;;  %v2239_v28 = vld [vmem:[%s5033_s1 + $0x970] sm:$0xff] }
 0xa3d   :  { %3652 = vmatprep.subr.bf16.mxu0 %v3784_v0 }
 0xa40   :  { %3654 = vmatpush3.bf16.msra.mxu0 %v3653_v32 }
 0xa41   :  { %3655 = vmatprep.subr.bf16.mxu0 %v3784_v0 }
 0xa44   :  { %3657 = vmatpush3.bf16.msra.mxu0 %v3656_v35  ;;  %v2204_v35 = vld [vmem:[%s5033_s1 + $0x878] sm:$0xff] }
 0xa45   :  { %3658 = vmatprep.subr.bf16.mxu0 %v3784_v0 }
 0xa48   :  { %3660 = vmatpush3.bf16.msra.mxu0 %v3659_v42 }
 0xa49   :  { %3685 = vmatprep.subr.bf16.mxu0 %v3784_v0 }
 0xafe   :  { %v1244_v37 = vpop.f32.mrb[12].mxu0 }
 0xaff   :  { %v1245_v38 = vadd.f32 %v2134_v36, %v1244_v37  ;;  %v3055_v39 = vpop.f32.mrb[13].mxu0  ;;  %v3707_v36 = vpack.c.bf16 %v2204_v35, %v2203_v34  ;;  %v2207_v37 = vld [vmem:[%s5033_s1 + $0x880] sm:$0xff]  ;;  %v2246_v34 = vld [vmem:[%s5033_s1 + $0x998] sm:$0xff] }
 0xb00   :  { %v2209_v39 = vld [vmem:[%s5033_s1 + $0x890] sm:$0xff] }
 0xb01   :  { %3089 = vmatmul.mubr.f32.vlgmr.msra.gmra.mrb[12].mxu1 %v1245_v38  ;;  %v2208_v38 = vld [vmem:[%s5033_s1 + $0x888] sm:$0xff]  ;;  %v3713_v42 = vpack.c.bf16 %v2210_v41, %v2209_v39  ;;  %v2249_v39 = vld [vmem:[%s5033_s1 + $0x9b0] sm:$0xff] }
 0xb02   :  { %3158 = vmatprep.mubr.msk.f32.mxu1 %vm3785_vm0, %v3786_v4  ;;  %3663 = vmatpush3.bf16.msra.mxu1 %v3662_v46  ;;  %v3710_v40 = vpack.c.bf16 %v2208_v38, %v2207_v37  ;;  %v2213_v46 = vld [vmem:[%s5033_s1 + $0x8b0] sm:$0xff]  ;;  %v2248_v37 = vld [vmem:[%s5033_s1 + $0x9a8] sm:$0xff] }
 0xb03   :  { %3664 = vmatprep.subr.bf16.mxu1 %v3784_v0 }
 0xb06   :  { %3666 = vmatpush3.bf16.msra.mxu1 %v3665_v48  ;;  %v3719_v48 = vpack.c.bf16 %v2214_v47, %v2213_v46  ;;  %v2254_v46 = vld [vmem:[%s5033_s1 + $0x9d8] sm:$0xff] }
 0xb07   :  { %3667 = vmatprep.subr.bf16.mxu1 %v3784_v0 }
 0xb0a   :  { %3669 = vmatpush3.bf16.msra.mxu1 %v3668_v51  ;;  %v3722_v51 = vpack.c.bf16 %v2216_v50, %v2215_v49  ;;  %v2256_v49 = vld [vmem:[%s5033_s1 + $0x9e8] sm:$0xff] }
 0xb0b   :  { %3670 = vmatprep.subr.bf16.mxu1 %v3784_v0 }
 0xb0e   :  { %3672 = vmatpush3.bf16.msra.mxu1 %v3671_v54  ;;  %v3725_v54 = vpack.c.bf16 %v2218_v53, %v2217_v52 }
 0xb0f   :  { %3673 = vmatprep.subr.bf16.mxu1 %v3784_v0 }
 0xb12   :  { %3675 = vmatpush3.bf16.msra.mxu1 %v3674_v57  ;;  %v3728_v57 = vpack.c.bf16 %v2220_v56, %v2219_v55  ;;  %v2257_v55 = vld [vmem:[%s5033_s1 + $0x9f0] sm:$0xff]  ;;  %v2258_v56 = vld [vmem:[%s5033_s1 + $0x9f8] sm:$0xff] }
 0xb13   :  { %3676 = vmatprep.subr.bf16.mxu1 %v3784_v0 }
 0xb16   :  { %3678 = vmatpush3.bf16.msra.mxu1 %v3677_v60 }
 0xb17   :  { %3679 = vmatprep.subr.bf16.mxu1 %v3784_v0 }
 0xb1a   :  { %3681 = vmatpush3.bf16.msra.mxu1 %v3680_v63  ;;  %v2222_v63 = vld [vmem:[%s5033_s1 + $0x8f8] sm:$0xff] }
 0xb1b   :  { %3682 = vmatprep.subr.bf16.mxu1 %v3784_v0 }
 0xb1e   :  { %3684 = vmatpush3.bf16.msra.mxu1 %v3683_v8 }
 0xb1f   :  { %3709 = vmatprep.subr.bf16.mxu1 %v3784_v0 }
 0xbd4   :  { %v1339_v2 = vpop.f32.mrb[12].mxu1 }
 0xbd5   :  { %v1340_v3 = vadd.f32 %v2152_v1, %v1339_v2  ;;  %v3090_v5 = vpop.f32.mrb[13].mxu1  ;;  %v3731_v1 = vpack.c.bf16 %v2222_v63, %v2221_v62  ;;  %v2225_v2 = vld [vmem:[%s5033_s1 + $0x900] sm:$0xff] }
 0xbd6   :  { %v2227_v5 = vld [vmem:[%s5033_s1 + $0x910] sm:$0xff] }
 0xbd7   :  { %3124 = vmatmul.mubr.f32.vlgmr.msra.gmra.mrb[14].mxu0 %v1340_v3  ;;  %v2226_v3 = vld [vmem:[%s5033_s1 + $0x908] sm:$0xff]  ;;  %v3737_v8 = vpack.c.bf16 %v2228_v7, %v2227_v5 }
 0xbd8   :  { %3193 = vmatprep.mubr.msk.f32.mxu0 %vm3785_vm0, %v3786_v4  ;;  %3687 = vmatpush3.bf16.msra.mxu0 %v3686_v12  ;;  %v3734_v6 = vpack.c.bf16 %v2226_v3, %v2225_v2  ;;  %v2231_v12 = vld [vmem:[%s5033_s1 + $0x930] sm:$0xff] }
 0xbd9   :  { %3688 = vmatprep.subr.bf16.mxu0 %v3784_v0 }
 0xbdc   :  { %3690 = vmatpush3.bf16.msra.mxu0 %v3689_v14  ;;  %v3743_v14 = vpack.c.bf16 %v2232_v13, %v2231_v12 }
 0xbdd   :  { %3691 = vmatprep.subr.bf16.mxu0 %v3784_v0 }
 0xbe0   :  { %3693 = vmatpush3.bf16.msra.mxu0 %v3692_v17  ;;  %v3746_v17 = vpack.c.bf16 %v2234_v16, %v2233_v15 }
 0xbe1   :  { %3694 = vmatprep.subr.bf16.mxu0 %v3784_v0 }
 0xbe4   :  { %3696 = vmatpush3.bf16.msra.mxu0 %v3695_v20  ;;  %v3749_v20 = vpack.c.bf16 %v2236_v19, %v2235_v18 }
 0xbe5   :  { %3697 = vmatprep.subr.bf16.mxu0 %v3784_v0 }
 0xbe8   :  { %3699 = vmatpush3.bf16.msra.mxu0 %v3698_v23  ;;  %v3752_v23 = vpack.c.bf16 %v2238_v22, %v2237_v21 }
 0xbe9   :  { %3700 = vmatprep.subr.bf16.mxu0 %v3784_v0 }
 0xbec   :  { %3702 = vmatpush3.bf16.msra.mxu0 %v3701_v26 }
 0xbed   :  { %3703 = vmatprep.subr.bf16.mxu0 %v3784_v0 }
 0xbf0   :  { %3705 = vmatpush3.bf16.msra.mxu0 %v3704_v29  ;;  %v2240_v29 = vld [vmem:[%s5033_s1 + $0x978] sm:$0xff] }
 0xbf1   :  { %3706 = vmatprep.subr.bf16.mxu0 %v3784_v0 }
 0xbf4   :  { %3708 = vmatpush3.bf16.msra.mxu0 %v3707_v36  ;;  %v2247_v36 = vld [vmem:[%s5033_s1 + $0x9a0] sm:$0xff] }
 0xbf5   :  { %3733 = vmatprep.subr.bf16.mxu0 %v3784_v0  ;;  %v3764_v38 = vpack.c.bf16 %v2248_v37, %v2247_v36 }
 0xcaa   :  { %v1434_v31 = vpop.f32.mrb[14].mxu0 }
 0xcab   :  { %v1435_v32 = vadd.f32 %v2170_v30, %v1434_v31  ;;  %v3125_v33 = vpop.f32.mrb[15].mxu0  ;;  %v3755_v30 = vpack.c.bf16 %v2240_v29, %v2239_v28  ;;  %v2243_v31 = vld [vmem:[%s5033_s1 + $0x980] sm:$0xff] }
 0xcad   :  { %3159 = vmatmul.mubr.f32.vlgmr.msra.gmra.mrb[14].mxu1 %v1435_v32  ;;  %v2244_v32 = vld [vmem:[%s5033_s1 + $0x988] sm:$0xff] }
 0xcae   :  { %3228 = vmatprep.mubr.msk.f32.mxu1 %vm3785_vm0, %v3786_v4  ;;  %3711 = vmatpush3.bf16.msra.mxu1 %v3710_v40  ;;  %v3758_v33 = vpack.c.bf16 %v2244_v32, %v2243_v31  ;;  %v2250_v40 = vld [vmem:[%s5033_s1 + $0x9b8] sm:$0xff] }
 0xcaf   :  { %3712 = vmatprep.subr.bf16.mxu1 %v3784_v0  ;;  %v3767_v41 = vpack.c.bf16 %v2250_v40, %v2249_v39 }
 0xcb2   :  { %3714 = vmatpush3.bf16.msra.mxu1 %v3713_v42  ;;  %v2251_v42 = vld [vmem:[%s5033_s1 + $0x9c0] sm:$0xff] }
 0xcb3   :  { %3715 = vmatprep.subr.bf16.mxu1 %v3784_v0  ;;  %v3770_v44 = vpack.c.bf16 %v2252_v43, %v2251_v42 }
 0xcb6   :  { %3717 = vmatpush3.bf16.msra.mxu1 %v3716_v45  ;;  %v2253_v45 = vld [vmem:[%s5033_s1 + $0x9d0] sm:$0xff] }
 0xcb7   :  { %3718 = vmatprep.subr.bf16.mxu1 %v3784_v0  ;;  %v3773_v47 = vpack.c.bf16 %v2254_v46, %v2253_v45 }
 0xcba   :  { %3720 = vmatpush3.bf16.msra.mxu1 %v3719_v48  ;;  %v2255_v48 = vld [vmem:[%s5033_s1 + $0x9e0] sm:$0xff] }
 0xcbb   :  { %3721 = vmatprep.subr.bf16.mxu1 %v3784_v0  ;;  %v3776_v50 = vpack.c.bf16 %v2256_v49, %v2255_v48 }
 0xcbe   :  { %3723 = vmatpush3.bf16.msra.mxu1 %v3722_v51  ;;  %v2224_v51 = vld [vmem:[%s5035_s2 + $0x11] ss:$0 sm:$0xff] }
 0xcbf   :  { %3724 = vmatprep.subr.bf16.mxu1 %v3784_v0 }
 0xcc2   :  { %3726 = vmatpush3.bf16.msra.mxu1 %v3725_v54 }
 0xcc3   :  { %3727 = vmatprep.subr.bf16.mxu1 %v3784_v0 }
 0xcc6   :  { %3729 = vmatpush3.bf16.msra.mxu1 %v3728_v57  ;;  %v3779_v57 = vpack.c.bf16 %v2258_v56, %v2257_v55 }
 0xcc7   :  { %3730 = vmatprep.subr.bf16.mxu1 %v3784_v0 }
 0xcca   :  { %3732 = vmatpush3.bf16.msra.mxu1 %v3731_v1 }
 0xccb   :  { %3757 = vmatprep.subr.bf16.mxu1 %v3784_v0 }
 0xd80   :  { %v1529_v59 = vpop.f32.mrb[14].mxu1 }
 0xd81   :  { %v1530_v60 = vadd.f32 %v2188_v58, %v1529_v59  ;;  %v3160_v61 = vpop.f32.mrb[15].mxu1 }
 0xd82   :  { %v2260_v61 = vld [vmem:[%s5035_s2 + $0x13] ss:$0 sm:$0xff] }
 0xd83   :  { %3194 = vmatmul.mubr.f32.vlgmr.msra.gmra.mrb[16].mxu0 %v1530_v60 }
 0xd84   :  { %3263 = vmatprep.mubr.msk.f32.mxu0 %vm3785_vm0, %v3786_v4  ;;  %3735 = vmatpush3.bf16.msra.mxu0 %v3734_v6 }
 0xd85   :  { %3736 = vmatprep.subr.bf16.mxu0 %v3784_v0 }
 0xd88   :  { %3738 = vmatpush3.bf16.msra.mxu0 %v3737_v8 }
 0xd89   :  { %3739 = vmatprep.subr.bf16.mxu0 %v3784_v0 }
 0xd8c   :  { %3741 = vmatpush3.bf16.msra.mxu0 %v3740_v11 }
 0xd8d   :  { %3742 = vmatprep.subr.bf16.mxu0 %v3784_v0 }
 0xd90   :  { %3744 = vmatpush3.bf16.msra.mxu0 %v3743_v14 }
 0xd91   :  { %3745 = vmatprep.subr.bf16.mxu0 %v3784_v0 }
 0xd94   :  { %3747 = vmatpush3.bf16.msra.mxu0 %v3746_v17 }
 0xd95   :  { %3748 = vmatprep.subr.bf16.mxu0 %v3784_v0 }
 0xd98   :  { %3750 = vmatpush3.bf16.msra.mxu0 %v3749_v20 }
 0xd99   :  { %3751 = vmatprep.subr.bf16.mxu0 %v3784_v0 }
 0xd9c   :  { %3753 = vmatpush3.bf16.msra.mxu0 %v3752_v23 }
 0xd9d   :  { %3754 = vmatprep.subr.bf16.mxu0 %v3784_v0 }
 0xda0   :  { %3756 = vmatpush3.bf16.msra.mxu0 %v3755_v30 }
 0xe56   :  { %v1624_v25 = vpop.f32.mrb[16].mxu0 }
 0xe57   :  { %v1625_v26 = vadd.f32 %v2206_v24, %v1624_v25  ;;  %v3195_v27 = vpop.f32.mrb[17].mxu0 }
 0xe59   :  { %3229 = vmatmul.mubr.f32.vlgmr.msra.gmra.mrb[16].mxu1 %v1625_v26 }
 0xe5a   :  { %3298 = vmatprep.mubr.msk.f32.mxu1 %vm3785_vm0, %v3786_v4  ;;  %v2245_v4 = vld [vmem:[%s5033_s1 + $0x990] sm:$0xff]  ;;  %3759 = vmatpush3.bf16.msra.mxu1 %v3758_v33 }
 0xe5b   :  { %v3761_v35 = vpack.c.bf16 %v2246_v34, %v2245_v4  ;;  %3760 = vmatprep.subr.bf16.mxu1 %v3784_v0 }
 0xe5e   :  { %3762 = vmatpush3.bf16.msra.mxu1 %v3761_v35 }
 0xe5f   :  { %3763 = vmatprep.subr.bf16.mxu1 %v3784_v0 }
 0xe62   :  { %3765 = vmatpush3.bf16.msra.mxu1 %v3764_v38 }
 0xe63   :  { %3766 = vmatprep.subr.bf16.mxu1 %v3784_v0 }
 0xe66   :  { %3768 = vmatpush3.bf16.msra.mxu1 %v3767_v41 }
 0xe67   :  { %3769 = vmatprep.subr.bf16.mxu1 %v3784_v0 }
 0xe6a   :  { %3771 = vmatpush3.bf16.msra.mxu1 %v3770_v44 }
 0xe6b   :  { %3772 = vmatprep.subr.bf16.mxu1 %v3784_v0 }
 0xe6e   :  { %3774 = vmatpush3.bf16.msra.mxu1 %v3773_v47 }
 0xe6f   :  { %3775 = vmatprep.subr.bf16.mxu1 %v3784_v0 }
 0xe72   :  { %3777 = vmatpush3.bf16.msra.mxu1 %v3776_v50 }
 0xe73   :  { %3778 = vmatprep.subr.bf16.mxu1 %v3784_v0  ;;  %v2242_v0 = vld [vmem:[%s5035_s2 + $0x12] ss:$0 sm:$0xff] }
 0xe76   :  { %3780 = vmatpush3.bf16.msra.mxu1 %v3779_v57 }
 0xf2c   :  { %v1719_v52 = vpop.f32.mrb[16].mxu1 }
 0xf2d   :  { %v1720_v53 = vadd.f32 %v2224_v51, %v1719_v52  ;;  %v3230_v54 = vpop.f32.mrb[17].mxu1 }
 0xf2f   :  { %3264 = vmatmul.mubr.f32.vlgmr.msra.gmra.mrb[18].mxu0 %v1720_v53 }
0x1002   :  { %v1814_v58 = vpop.f32.mrb[18].mxu0 }
0x1003   :  { %v1815_v59 = vadd.f32 %v2242_v0, %v1814_v58  ;;  %v3265_v60 = vpop.f32.mrb[19].mxu0 }
0x1005   :  { %3299 = vmatmul.mubr.f32.vlgmr.msra.gmra.mrb[18].mxu1 %v1815_v59 }
0x10d8   :  { %v1909_v62 = vpop.f32.mrb[18].mxu1 }
0x10d9   :  { %v1910_v63 = vadd.f32 %v2260_v61, %v1909_v62  ;;  %v3300_v1 = vpop.f32.mrb[19].mxu1 }
0x10db   :  { %1913 = vst [vmem:[%s5036_s3] sm:$0xff] %v1910_v63 }

</bundles_post_ra>
